<compile_context>
chip_gen: v5e
topology: v5e:2x2
jax: 0.10.0
libtpu: 0.0.40
codegen_flags: <defaults>
</compile_context>

<pallas_src>
import functools
import math

import jax
import jax.numpy as jnp
from jax.experimental import pallas as pl
from jax.experimental.pallas import tpu as pltpu

GP = 128  # per-gate lane tile width (gates live at lane offsets 0 / 128 / 256)


# ---------------------------------------------------------------------------
# Fused kernel: masked single-layer GRU over N = B*R sequences + ResourceToEdgeConv.
# ---------------------------------------------------------------------------
def time_embedding_kernel(x_ref, wi_ref, wh_ref, post_ref, mask_ref, o_ref, i_scr,
                          *, T, N, B, H, F):
    # x_ref:    (T*N, F+2)  time-major inputs; col F = 1.0 (bias fold), col F+1 = 0.0
    # wi_ref:   (F+2, 3*GP) rows 0..F-1: W_ih^T gate-tile padded;
    #                       row F: folded input(+hidden r,z) biases; row F+1: b_hn stash
    # wh_ref:   (GP, 3*GP)  W_hh^T, rows H..GP-1 zero, gate-tile padded columns
    # post_ref: (GP+N+B+1, R*O) rows 0:GP W_fc^T tiled (rows>=H zero), GP:GP+N adjacency
    #                       expanded, GP+N:GP+N+B batch-selection (lanes 0:N real), last row bias
    # mask_ref: (T*N, 1)    exact {0,1} float mask, mask[t*N+n] = (t < lengths[n])
    # o_ref:    (B, R*O)    lane-dense output (reshaped to (B, R, O) by the wrapper)
    # i_scr:    (T*N, 3*GP) VMEM scratch for the hoisted input projection

    # 1) Hoisted input projection for all timesteps & gates; biases folded in via the
    #    constant-1 column of x (the zero column makes the b_hn stash row inert).
    i_scr[...] = jnp.dot(x_ref[...], wi_ref[...], preferred_element_type=jnp.float32)

    # 2) Loop-invariant loads (once, off the recurrence chain).
    w_h = wh_ref[...]                       # (GP, 3*GP)
    bh_n = wi_ref[F + 1:F + 2, 0:GP]        # (1, GP): lanes 0..H-1 = b_hn, rest 0

    def sigm(v):  # logistic via a single EUP tanh (no exp + reciprocal round trips)
        return 0.5 * jnp.tanh(0.5 * v) + 0.5

    # 3) t = 0 peeled: h == 0, so the hidden-gate matmul is skipped entirely.
    g_i = i_scr[0:N, :]                     # (N, 3*GP), sublane-aligned slice
    r = sigm(g_i[:, 0:GP])
    z = sigm(g_i[:, GP:2 * GP])
    n = jnp.tanh(g_i[:, 2 * GP:3 * GP] + r * bh_n)
    m = mask_ref[0:N, :]
    h = m * ((1.0 - z) * n)                 # (N, GP); lanes H..GP-1 stay exactly 0

    # 4) Remaining steps, fully unrolled (T static). Gate slices are 128-lane-tile
    #    aligned -> no per-step lane rotations. N must stay a multiple of 8 for the
    #    sublane slices of i_scr / mask_ref to remain tile-aligned (N = 16 here).
    for t in range(1, T):
        g_i = i_scr[t * N:(t + 1) * N, :]
        g_h = jnp.dot(h, w_h, preferred_element_type=jnp.float32)       # (N, 3*GP)
        r = sigm(g_i[:, 0:GP] + g_h[:, 0:GP])
        z = sigm(g_i[:, GP:2 * GP] + g_h[:, GP:2 * GP])
        n = jnp.tanh(g_i[:, 2 * GP:3 * GP] + r * (g_h[:, 2 * GP:3 * GP] + bh_n))
        h_new = (1.0 - z) * n + z * h
        # PackedSequence semantics: freeze sequences past their length (exact 0/1 mask).
        m = mask_ref[t * N:(t + 1) * N, :]
        h = m * h_new + (1.0 - m) * h

    # 5) ResourceToEdgeConv (Identity activation), lane-dense (B, R*O) output.
    wk = post_ref[0:GP, :]                              # (GP, R*O)
    adje = post_ref[GP:GP + N, :]                       # (N, R*O)
    sel = post_ref[GP + N:GP + N + B, 0:N]              # (B, N)
    bias = post_ref[GP + N + B:GP + N + B + 1, :]       # (1, R*O)
    p = jnp.dot(h, wk, preferred_element_type=jnp.float32)              # (N, R*O)
    z2 = p * adje
    o_ref[...] = jnp.dot(sel, z2, preferred_element_type=jnp.float32) + bias


# ---------------------------------------------------------------------------
# Wrapper / parameter preparation
# ---------------------------------------------------------------------------
def prepare_params(w_ih, w_hh, b_ih, b_hh, w_fc, edge_bias, adjacency, B, R):
    """Convert PyTorch-layout parameters into the kernel's packed, gate-tile-padded layout."""
    H = w_hh.shape[1]
    F = w_ih.shape[1]
    O = w_fc.shape[0]
    N = B * R
    RO = R * O

    def pad_gate_cols(w):  # (rows, 3H) -> (rows, 3*GP): gate g at lanes [g*GP, g*GP+H)
        rows = w.shape[0]
        out = jnp.zeros((rows, 3 * GP), jnp.float32)
        for g in range(3):
            out = out.at[:, g * GP:g * GP + H].set(w[:, g * H:(g + 1) * H])
        return out

    # Input-side pack: W_ih^T rows, folded-bias row (b_i + b_h for r,z gates), b_hn stash row.
    w_i_cols = pad_gate_cols(w_ih.T)                                        # (F, 3*GP)
    b_fold = jnp.concatenate([b_ih[0:H] + b_hh[0:H],
                              b_ih[H:2 * H] + b_hh[H:2 * H],
                              b_ih[2 * H:3 * H]])                           # (3H,)
    b_row = pad_gate_cols(b_fold.reshape(1, 3 * H))                         # (1, 3*GP)
    bhn_row = jnp.zeros((1, 3 * GP), jnp.float32).at[0, 0:H].set(b_hh[2 * H:3 * H])
    w_i_pack = jnp.concatenate([w_i_cols, b_row, bhn_row], axis=0)          # (F+2, 3*GP)

    # Hidden-side weights: gate-tile padded columns, rows padded H -> GP with zeros.
    w_h_pad = jnp.zeros((GP, 3 * GP), jnp.float32).at[0:H, :].set(pad_gate_cols(w_hh.T))

    # Post pack: fc weight (tiled per resource, rows padded), expanded adjacency,
    # batch-selection matrix (lanes 0:N real), edge-conv bias row.
    wk_pad = jnp.zeros((GP, RO), jnp.float32).at[0:H, :].set(jnp.tile(w_fc.T, (1, R)))
    adje = jnp.tile(jnp.repeat(adjacency.T, O, axis=1), (B, 1))             # (N, RO)
    sel = jnp.zeros((B, RO), jnp.float32).at[:, 0:N].set(
        jnp.repeat(jnp.eye(B, dtype=jnp.float32), R, axis=1))               # (B, RO)
    bias_row = jnp.tile(edge_bias.reshape(1, O), (1, R))                    # (1, RO)
    post_pack = jnp.concatenate([wk_pad, adje, sel, bias_row], axis=0)      # (GP+N+B+1, RO)

    return {"w_i_pack": w_i_pack, "w_h_pad": w_h_pad, "post_pack": post_pack,
            "H": H, "F": F, "O": O}


def time_embedding_forward(x_btf, lengths, prep, B, R):
    """x_btf: (N, T, F) padded batch-first sequences; lengths: (N,) int32 valid lengths."""
    N, T, F = x_btf.shape
    H, O = prep["H"], prep["O"]
    RO = R * O

    # Time-major, fold time into rows, append the constant 1/0 columns (bias fold / inert row).
    x_flat = jnp.transpose(x_btf, (1, 0, 2)).reshape(T * N, F)
    x_aug = jnp.concatenate(
        [x_flat, jnp.ones((T * N, 1), jnp.float32), jnp.zeros((T * N, 1), jnp.float32)],
        axis=1)                                                             # (T*N, F+2)
    # Exact {0,1} mask from integer lengths (row t*N+n corresponds to timestep t, seq n).
    mask = (jnp.arange(T, dtype=jnp.int32)[:, None] < lengths[None, :]
            ).astype(jnp.float32).reshape(T * N, 1)

    flops = 2 * (T * N * (F + 2) * 3 * GP) + 2 * ((T - 1) * N * GP * 3 * GP) \
        + 2 * (N * GP * RO) + 2 * (B * N * RO)
    bytes_accessed = 4 * (x_aug.size + prep["w_i_pack"].size + prep["w_h_pad"].size
                          + prep["post_pack"].size + mask.size + B * RO)

    vmem = pl.BlockSpec(memory_space=pltpu.MemorySpace.VMEM)
    out_flat = pl.pallas_call(
        functools.partial(time_embedding_kernel, T=T, N=N, B=B, H=H, F=F),
        out_shape=jax.ShapeDtypeStruct((B, RO), jnp.float32),
        in_specs=[vmem] * 5,
        out_specs=vmem,
        scratch_shapes=[pltpu.VMEM((T * N, 3 * GP), jnp.float32)],
        cost_estimate=pl.CostEstimate(flops=flops, transcendentals=3 * T * N * GP,
                                      bytes_accessed=bytes_accessed),
    )(x_aug, prep["w_i_pack"], prep["w_h_pad"], prep["post_pack"], mask)
    return out_flat.reshape(B, R, O)


# ---------------------------------------------------------------------------
# Pure-JAX reference (PyTorch GRU + ResourceToEdgeConv semantics)
# ---------------------------------------------------------------------------
def reference_forward(x_btf, lengths, w_ih, w_hh, b_ih, b_hh, w_fc, edge_bias,
                      adjacency, B, R):
    N, T, _ = x_btf.shape
    H = w_hh.shape[1]
    h = jnp.zeros((N, H), jnp.float32)
    for t in range(T):
        x_t = x_btf[:, t, :]
        gi = x_t @ w_ih.T + b_ih
        gh = h @ w_hh.T + b_hh
        i_r, i_z, i_n = jnp.split(gi, 3, axis=1)
        h_r, h_z, h_n = jnp.split(gh, 3, axis=1)
        r = jax.nn.sigmoid(i_r + h_r)
        z = jax.nn.sigmoid(i_z + h_z)
        n = jnp.tanh(i_n + r * h_n)
        h_new = (1.0 - z) * n + z * h
        valid = (t < lengths).astype(jnp.float32)[:, None]
        h = valid * h_new + (1.0 - valid) * h
    hb = h.reshape(B, R, H)
    xw = hb @ w_fc.T                                           # (B, R, O)
    return jnp.einsum("ij,bjo->bio", adjacency, xw) + edge_bias.reshape(1, 1, -1)


if __name__ == "__main__":
    B, R, T = 2, 8, 6
    F, H, O = 18, 32, 16          # feature_dim=18, hidden_dim, final_output_size
    N = B * R

    key = jax.random.PRNGKey(0)
    keys = jax.random.split(key, 10)

    stdv = 1.0 / math.sqrt(H)
    # GRU params in PyTorch layout: weight_ih (3H, F), weight_hh (3H, H), gate order r,z,n.
    w_ih = jax.random.uniform(keys[0], (3 * H, F), jnp.float32, -stdv, stdv)
    w_hh = jax.random.uniform(keys[1], (3 * H, H), jnp.float32, -stdv, stdv)
    b_ih = jax.random.uniform(keys[2], (3 * H,), jnp.float32, -stdv, stdv)
    b_hh = jax.random.uniform(keys[3], (3 * H,), jnp.float32, -stdv, stdv)
    # ResourceToEdgeConv: fc (no bias) weight (O, H); separate bias (O,); adjacency (R, R).
    w_fc = jax.random.uniform(keys[4], (O, H), jnp.float32, -stdv, stdv)
    edge_bias = jax.random.uniform(keys[5], (O,), jnp.float32, -stdv, stdv)
    adjacency = jnp.ones((R, R), jnp.float32) / R      # deterministic row-normalized adjacency

    prep = prepare_params(w_ih, w_hh, b_ih, b_hh, w_fc, edge_bias, adjacency, B, R)

    # Synthetic "packed" input: padded (N, T, F) batch-first + per-sequence lengths.
    x_btf = jax.random.normal(keys[6], (N, T, F), jnp.float32)
    lengths = (jnp.arange(N, dtype=jnp.int32) % (T - 2)) + 3           # lengths in [3, T]

    out = time_embedding_forward(x_btf, lengths, prep, B, R)
    jax.block_until_ready(out)
    assert out.shape == (B, R, O)

    ref = reference_forward(x_btf, lengths, w_ih, w_hh, b_ih, b_hh, w_fc, edge_bias,
                            adjacency, B, R)
    max_err = float(jnp.max(jnp.abs(out - ref)))
    assert max_err < 1e-4, f"mismatch vs reference: {max_err}"

    print("KERNEL_OK")
</pallas_src>

<mosaic_0001>
module attributes {stable_mosaic.version = 11 : i64} {
  func.func @time_embedding_kernel(%arg0: memref<96x20xf32, #tpu.memory_space<vmem>>, %arg1: memref<20x384xf32, #tpu.memory_space<vmem>>, %arg2: memref<128x384xf32, #tpu.memory_space<vmem>>, %arg3: memref<147x128xf32, #tpu.memory_space<vmem>>, %arg4: memref<96x1xf32, #tpu.memory_space<vmem>>, %arg5: memref<2x128xf32, #tpu.memory_space<vmem>>, %arg6: memref<96x384xf32, #tpu.memory_space<vmem>>) attributes {dimension_semantics = [], scalar_prefetch = 0 : i64, scratch_operands = 1 : i64, tpu.core_type = #tpu.core_type<tc>} {
    %c0 = arith.constant 0 : index
    %c0_0 = arith.constant 0 : index
    %0 = vector.load %arg0[%c0, %c0_0] : memref<96x20xf32, #tpu.memory_space<vmem>>, vector<96x20xf32>
    %c0_1 = arith.constant 0 : index
    %c0_2 = arith.constant 0 : index
    %1 = vector.load %arg1[%c0_1, %c0_2] : memref<20x384xf32, #tpu.memory_space<vmem>>, vector<20x384xf32>
    %cst = arith.constant dense<0.000000e+00> : vector<96x384xf32>
    %2 = tpu.matmul %0, %1, %cst {dimension_numbers = #tpu.dot_dimension_numbers<[1], [0], [0], [1], [0, 0, 1, 1], [], []>} : vector<96x20xf32>, vector<20x384xf32>, vector<96x384xf32> -> vector<96x384xf32>
    %c0_3 = arith.constant 0 : index
    %c0_4 = arith.constant 0 : index
    %3 = vector.load %arg6[%c0_3, %c0_4] : memref<96x384xf32, #tpu.memory_space<vmem>>, vector<96x384xf32>
    tpu.vector_store %arg6[%c0_3, %c0_4], %2 {strides = array<i32>} : memref<96x384xf32, #tpu.memory_space<vmem>>, vector<96x384xf32>,
    %c0_5 = arith.constant 0 : index
    %c0_6 = arith.constant 0 : index
    %4 = vector.load %arg2[%c0_5, %c0_6] : memref<128x384xf32, #tpu.memory_space<vmem>>, vector<128x384xf32>
    %c19 = arith.constant 19 : index
    %c0_7 = arith.constant 0 : index
    %5 = vector.load %arg1[%c19, %c0_7] : memref<20x384xf32, #tpu.memory_space<vmem>>, vector<1x128xf32>
    %c0_8 = arith.constant 0 : index
    %c0_9 = arith.constant 0 : index
    %6 = vector.load %arg6[%c0_8, %c0_9] : memref<96x384xf32, #tpu.memory_space<vmem>>, vector<16x384xf32>
    %7 = vector.extract_strided_slice %6 {offsets = [0, 0], sizes = [16, 128], strides = [1, 1]} : vector<16x384xf32> to vector<16x128xf32>
    %cst_10 = arith.constant 5.000000e-01 : f32
    %8 = vector.broadcast %cst_10 : f32 to vector<16x128xf32>
    %9 = arith.mulf %8, %7 : vector<16x128xf32>
    %10 = math.tanh %9 : vector<16x128xf32>
    %cst_11 = arith.constant 5.000000e-01 : f32
    %11 = vector.broadcast %cst_11 : f32 to vector<16x128xf32>
    %12 = arith.mulf %11, %10 : vector<16x128xf32>
    %cst_12 = arith.constant 5.000000e-01 : f32
    %13 = vector.broadcast %cst_12 : f32 to vector<16x128xf32>
    %14 = arith.addf %12, %13 : vector<16x128xf32>
    %15 = vector.extract_strided_slice %6 {offsets = [0, 128], sizes = [16, 128], strides = [1, 1]} : vector<16x384xf32> to vector<16x128xf32>
    %cst_13 = arith.constant 5.000000e-01 : f32
    %16 = vector.broadcast %cst_13 : f32 to vector<16x128xf32>
    %17 = arith.mulf %16, %15 : vector<16x128xf32>
    %18 = math.tanh %17 : vector<16x128xf32>
    %cst_14 = arith.constant 5.000000e-01 : f32
    %19 = vector.broadcast %cst_14 : f32 to vector<16x128xf32>
    %20 = arith.mulf %19, %18 : vector<16x128xf32>
    %cst_15 = arith.constant 5.000000e-01 : f32
    %21 = vector.broadcast %cst_15 : f32 to vector<16x128xf32>
    %22 = arith.addf %20, %21 : vector<16x128xf32>
    %23 = vector.extract_strided_slice %6 {offsets = [0, 256], sizes = [16, 128], strides = [1, 1]} : vector<16x384xf32> to vector<16x128xf32>
    %24 = vector.broadcast %5 : vector<1x128xf32> to vector<16x128xf32>
    %25 = arith.mulf %14, %24 : vector<16x128xf32>
    %26 = arith.addf %23, %25 : vector<16x128xf32>
    %27 = math.tanh %26 : vector<16x128xf32>
    %c0_16 = arith.constant 0 : index
    %c0_17 = arith.constant 0 : index
    %28 = vector.load %arg4[%c0_16, %c0_17] : memref<96x1xf32, #tpu.memory_space<vmem>>, vector<16x1xf32>
    %cst_18 = arith.constant 1.000000e+00 : f32
    %29 = vector.broadcast %cst_18 : f32 to vector<16x128xf32>
    %30 = arith.subf %29, %22 : vector<16x128xf32>
    %31 = arith.mulf %30, %27 : vector<16x128xf32>
    %32 = vector.broadcast %28 : vector<16x1xf32> to vector<16x128xf32>
    %33 = arith.mulf %32, %31 : vector<16x128xf32>
    %c16 = arith.constant 16 : index
    %c0_19 = arith.constant 0 : index
    %34 = vector.load %arg6[%c16, %c0_19] : memref<96x384xf32, #tpu.memory_space<vmem>>, vector<16x384xf32>
    %cst_20 = arith.constant dense<0.000000e+00> : vector<16x384xf32>
    %35 = tpu.matmul %33, %4, %cst_20 {dimension_numbers = #tpu.dot_dimension_numbers<[1], [0], [0], [1], [0, 0, 1, 1], [], []>} : vector<16x128xf32>, vector<128x384xf32>, vector<16x384xf32> -> vector<16x384xf32>
    %36 = vector.extract_strided_slice %34 {offsets = [0, 0], sizes = [16, 128], strides = [1, 1]} : vector<16x384xf32> to vector<16x128xf32>
    %37 = vector.extract_strided_slice %35 {offsets = [0, 0], sizes = [16, 128], strides = [1, 1]} : vector<16x384xf32> to vector<16x128xf32>
    %38 = arith.addf %36, %37 : vector<16x128xf32>
    %cst_21 = arith.constant 5.000000e-01 : f32
    %39 = vector.broadcast %cst_21 : f32 to vector<16x128xf32>
    %40 = arith.mulf %39, %38 : vector<16x128xf32>
    %41 = math.tanh %40 : vector<16x128xf32>
    %cst_22 = arith.constant 5.000000e-01 : f32
    %42 = vector.broadcast %cst_22 : f32 to vector<16x128xf32>
    %43 = arith.mulf %42, %41 : vector<16x128xf32>
    %cst_23 = arith.constant 5.000000e-01 : f32
    %44 = vector.broadcast %cst_23 : f32 to vector<16x128xf32>
    %45 = arith.addf %43, %44 : vector<16x128xf32>
    %46 = vector.extract_strided_slice %34 {offsets = [0, 128], sizes = [16, 128], strides = [1, 1]} : vector<16x384xf32> to vector<16x128xf32>
    %47 = vector.extract_strided_slice %35 {offsets = [0, 128], sizes = [16, 128], strides = [1, 1]} : vector<16x384xf32> to vector<16x128xf32>
    %48 = arith.addf %46, %47 : vector<16x128xf32>
    %cst_24 = arith.constant 5.000000e-01 : f32
    %49 = vector.broadcast %cst_24 : f32 to vector<16x128xf32>
    %50 = arith.mulf %49, %48 : vector<16x128xf32>
    %51 = math.tanh %50 : vector<16x128xf32>
    %cst_25 = arith.constant 5.000000e-01 : f32
    %52 = vector.broadcast %cst_25 : f32 to vector<16x128xf32>
    %53 = arith.mulf %52, %51 : vector<16x128xf32>
    %cst_26 = arith.constant 5.000000e-01 : f32
    %54 = vector.broadcast %cst_26 : f32 to vector<16x128xf32>
    %55 = arith.addf %53, %54 : vector<16x128xf32>
    %56 = vector.extract_strided_slice %34 {offsets = [0, 256], sizes = [16, 128], strides = [1, 1]} : vector<16x384xf32> to vector<16x128xf32>
    %57 = vector.extract_strided_slice %35 {offsets = [0, 256], sizes = [16, 128], strides = [1, 1]} : vector<16x384xf32> to vector<16x128xf32>
    %58 = vector.broadcast %5 : vector<1x128xf32> to vector<16x128xf32>
    %59 = arith.addf %57, %58 : vector<16x128xf32>
    %60 = arith.mulf %45, %59 : vector<16x128xf32>
    %61 = arith.addf %56, %60 : vector<16x128xf32>
    %62 = math.tanh %61 : vector<16x128xf32>
    %cst_27 = arith.constant 1.000000e+00 : f32
    %63 = vector.broadcast %cst_27 : f32 to vector<16x128xf32>
    %64 = arith.subf %63, %55 : vector<16x128xf32>
    %65 = arith.mulf %64, %62 : vector<16x128xf32>
    %66 = arith.mulf %55, %33 : vector<16x128xf32>
    %67 = arith.addf %65, %66 : vector<16x128xf32>
    %c16_28 = arith.constant 16 : index
    %c0_29 = arith.constant 0 : index
    %68 = vector.load %arg4[%c16_28, %c0_29] : memref<96x1xf32, #tpu.memory_space<vmem>>, vector<16x1xf32>
    %69 = vector.broadcast %68 : vector<16x1xf32> to vector<16x128xf32>
    %70 = arith.mulf %69, %67 : vector<16x128xf32>
    %cst_30 = arith.constant 1.000000e+00 : f32
    %71 = vector.broadcast %cst_30 : f32 to vector<16x1xf32>
    %72 = arith.subf %71, %68 : vector<16x1xf32>
    %73 = vector.broadcast %72 : vector<16x1xf32> to vector<16x128xf32>
    %74 = arith.mulf %73, %33 : vector<16x128xf32>
    %75 = arith.addf %70, %74 : vector<16x128xf32>
    %c32 = arith.constant 32 : index
    %c0_31 = arith.constant 0 : index
    %76 = vector.load %arg6[%c32, %c0_31] : memref<96x384xf32, #tpu.memory_space<vmem>>, vector<16x384xf32>
    %cst_32 = arith.constant dense<0.000000e+00> : vector<16x384xf32>
    %77 = tpu.matmul %75, %4, %cst_32 {dimension_numbers = #tpu.dot_dimension_numbers<[1], [0], [0], [1], [0, 0, 1, 1], [], []>} : vector<16x128xf32>, vector<128x384xf32>, vector<16x384xf32> -> vector<16x384xf32>
    %78 = vector.extract_strided_slice %76 {offsets = [0, 0], sizes = [16, 128], strides = [1, 1]} : vector<16x384xf32> to vector<16x128xf32>
    %79 = vector.extract_strided_slice %77 {offsets = [0, 0], sizes = [16, 128], strides = [1, 1]} : vector<16x384xf32> to vector<16x128xf32>
    %80 = arith.addf %78, %79 : vector<16x128xf32>
    %cst_33 = arith.constant 5.000000e-01 : f32
    %81 = vector.broadcast %cst_33 : f32 to vector<16x128xf32>
    %82 = arith.mulf %81, %80 : vector<16x128xf32>
    %83 = math.tanh %82 : vector<16x128xf32>
    %cst_34 = arith.constant 5.000000e-01 : f32
    %84 = vector.broadcast %cst_34 : f32 to vector<16x128xf32>
    %85 = arith.mulf %84, %83 : vector<16x128xf32>
    %cst_35 = arith.constant 5.000000e-01 : f32
    %86 = vector.broadcast %cst_35 : f32 to vector<16x128xf32>
    %87 = arith.addf %85, %86 : vector<16x128xf32>
    %88 = vector.extract_strided_slice %76 {offsets = [0, 128], sizes = [16, 128], strides = [1, 1]} : vector<16x384xf32> to vector<16x128xf32>
    %89 = vector.extract_strided_slice %77 {offsets = [0, 128], sizes = [16, 128], strides = [1, 1]} : vector<16x384xf32> to vector<16x128xf32>
    %90 = arith.addf %88, %89 : vector<16x128xf32>
    %cst_36 = arith.constant 5.000000e-01 : f32
    %91 = vector.broadcast %cst_36 : f32 to vector<16x128xf32>
    %92 = arith.mulf %91, %90 : vector<16x128xf32>
    %93 = math.tanh %92 : vector<16x128xf32>
    %cst_37 = arith.constant 5.000000e-01 : f32
    %94 = vector.broadcast %cst_37 : f32 to vector<16x128xf32>
    %95 = arith.mulf %94, %93 : vector<16x128xf32>
    %cst_38 = arith.constant 5.000000e-01 : f32
    %96 = vector.broadcast %cst_38 : f32 to vector<16x128xf32>
    %97 = arith.addf %95, %96 : vector<16x128xf32>
    %98 = vector.extract_strided_slice %76 {offsets = [0, 256], sizes = [16, 128], strides = [1, 1]} : vector<16x384xf32> to vector<16x128xf32>
    %99 = vector.extract_strided_slice %77 {offsets = [0, 256], sizes = [16, 128], strides = [1, 1]} : vector<16x384xf32> to vector<16x128xf32>
    %100 = vector.broadcast %5 : vector<1x128xf32> to vector<16x128xf32>
    %101 = arith.addf %99, %100 : vector<16x128xf32>
    %102 = arith.mulf %87, %101 : vector<16x128xf32>
    %103 = arith.addf %98, %102 : vector<16x128xf32>
    %104 = math.tanh %103 : vector<16x128xf32>
    %cst_39 = arith.constant 1.000000e+00 : f32
    %105 = vector.broadcast %cst_39 : f32 to vector<16x128xf32>
    %106 = arith.subf %105, %97 : vector<16x128xf32>
    %107 = arith.mulf %106, %104 : vector<16x128xf32>
    %108 = arith.mulf %97, %75 : vector<16x128xf32>
    %109 = arith.addf %107, %108 : vector<16x128xf32>
    %c32_40 = arith.constant 32 : index
    %c0_41 = arith.constant 0 : index
    %110 = vector.load %arg4[%c32_40, %c0_41] : memref<96x1xf32, #tpu.memory_space<vmem>>, vector<16x1xf32>
    %111 = vector.broadcast %110 : vector<16x1xf32> to vector<16x128xf32>
    %112 = arith.mulf %111, %109 : vector<16x128xf32>
    %cst_42 = arith.constant 1.000000e+00 : f32
    %113 = vector.broadcast %cst_42 : f32 to vector<16x1xf32>
    %114 = arith.subf %113, %110 : vector<16x1xf32>
    %115 = vector.broadcast %114 : vector<16x1xf32> to vector<16x128xf32>
    %116 = arith.mulf %115, %75 : vector<16x128xf32>
    %117 = arith.addf %112, %116 : vector<16x128xf32>
    %c48 = arith.constant 48 : index
    %c0_43 = arith.constant 0 : index
    %118 = vector.load %arg6[%c48, %c0_43] : memref<96x384xf32, #tpu.memory_space<vmem>>, vector<16x384xf32>
    %cst_44 = arith.constant dense<0.000000e+00> : vector<16x384xf32>
    %119 = tpu.matmul %117, %4, %cst_44 {dimension_numbers = #tpu.dot_dimension_numbers<[1], [0], [0], [1], [0, 0, 1, 1], [], []>} : vector<16x128xf32>, vector<128x384xf32>, vector<16x384xf32> -> vector<16x384xf32>
    %120 = vector.extract_strided_slice %118 {offsets = [0, 0], sizes = [16, 128], strides = [1, 1]} : vector<16x384xf32> to vector<16x128xf32>
    %121 = vector.extract_strided_slice %119 {offsets = [0, 0], sizes = [16, 128], strides = [1, 1]} : vector<16x384xf32> to vector<16x128xf32>
    %122 = arith.addf %120, %121 : vector<16x128xf32>
    %cst_45 = arith.constant 5.000000e-01 : f32
    %123 = vector.broadcast %cst_45 : f32 to vector<16x128xf32>
    %124 = arith.mulf %123, %122 : vector<16x128xf32>
    %125 = math.tanh %124 : vector<16x128xf32>
    %cst_46 = arith.constant 5.000000e-01 : f32
    %126 = vector.broadcast %cst_46 : f32 to vector<16x128xf32>
    %127 = arith.mulf %126, %125 : vector<16x128xf32>
    %cst_47 = arith.constant 5.000000e-01 : f32
    %128 = vector.broadcast %cst_47 : f32 to vector<16x128xf32>
    %129 = arith.addf %127, %128 : vector<16x128xf32>
    %130 = vector.extract_strided_slice %118 {offsets = [0, 128], sizes = [16, 128], strides = [1, 1]} : vector<16x384xf32> to vector<16x128xf32>
    %131 = vector.extract_strided_slice %119 {offsets = [0, 128], sizes = [16, 128], strides = [1, 1]} : vector<16x384xf32> to vector<16x128xf32>
    %132 = arith.addf %130, %131 : vector<16x128xf32>
    %cst_48 = arith.constant 5.000000e-01 : f32
    %133 = vector.broadcast %cst_48 : f32 to vector<16x128xf32>
    %134 = arith.mulf %133, %132 : vector<16x128xf32>
    %135 = math.tanh %134 : vector<16x128xf32>
    %cst_49 = arith.constant 5.000000e-01 : f32
    %136 = vector.broadcast %cst_49 : f32 to vector<16x128xf32>
    %137 = arith.mulf %136, %135 : vector<16x128xf32>
    %cst_50 = arith.constant 5.000000e-01 : f32
    %138 = vector.broadcast %cst_50 : f32 to vector<16x128xf32>
    %139 = arith.addf %137, %138 : vector<16x128xf32>
    %140 = vector.extract_strided_slice %118 {offsets = [0, 256], sizes = [16, 128], strides = [1, 1]} : vector<16x384xf32> to vector<16x128xf32>
    %141 = vector.extract_strided_slice %119 {offsets = [0, 256], sizes = [16, 128], strides = [1, 1]} : vector<16x384xf32> to vector<16x128xf32>
    %142 = vector.broadcast %5 : vector<1x128xf32> to vector<16x128xf32>
    %143 = arith.addf %141, %142 : vector<16x128xf32>
    %144 = arith.mulf %129, %143 : vector<16x128xf32>
    %145 = arith.addf %140, %144 : vector<16x128xf32>
    %146 = math.tanh %145 : vector<16x128xf32>
    %cst_51 = arith.constant 1.000000e+00 : f32
    %147 = vector.broadcast %cst_51 : f32 to vector<16x128xf32>
    %148 = arith.subf %147, %139 : vector<16x128xf32>
    %149 = arith.mulf %148, %146 : vector<16x128xf32>
    %150 = arith.mulf %139, %117 : vector<16x128xf32>
    %151 = arith.addf %149, %150 : vector<16x128xf32>
    %c48_52 = arith.constant 48 : index
    %c0_53 = arith.constant 0 : index
    %152 = vector.load %arg4[%c48_52, %c0_53] : memref<96x1xf32, #tpu.memory_space<vmem>>, vector<16x1xf32>
    %153 = vector.broadcast %152 : vector<16x1xf32> to vector<16x128xf32>
    %154 = arith.mulf %153, %151 : vector<16x128xf32>
    %cst_54 = arith.constant 1.000000e+00 : f32
    %155 = vector.broadcast %cst_54 : f32 to vector<16x1xf32>
    %156 = arith.subf %155, %152 : vector<16x1xf32>
    %157 = vector.broadcast %156 : vector<16x1xf32> to vector<16x128xf32>
    %158 = arith.mulf %157, %117 : vector<16x128xf32>
    %159 = arith.addf %154, %158 : vector<16x128xf32>
    %c64 = arith.constant 64 : index
    %c0_55 = arith.constant 0 : index
    %160 = vector.load %arg6[%c64, %c0_55] : memref<96x384xf32, #tpu.memory_space<vmem>>, vector<16x384xf32>
    %cst_56 = arith.constant dense<0.000000e+00> : vector<16x384xf32>
    %161 = tpu.matmul %159, %4, %cst_56 {dimension_numbers = #tpu.dot_dimension_numbers<[1], [0], [0], [1], [0, 0, 1, 1], [], []>} : vector<16x128xf32>, vector<128x384xf32>, vector<16x384xf32> -> vector<16x384xf32>
    %162 = vector.extract_strided_slice %160 {offsets = [0, 0], sizes = [16, 128], strides = [1, 1]} : vector<16x384xf32> to vector<16x128xf32>
    %163 = vector.extract_strided_slice %161 {offsets = [0, 0], sizes = [16, 128], strides = [1, 1]} : vector<16x384xf32> to vector<16x128xf32>
    %164 = arith.addf %162, %163 : vector<16x128xf32>
    %cst_57 = arith.constant 5.000000e-01 : f32
    %165 = vector.broadcast %cst_57 : f32 to vector<16x128xf32>
    %166 = arith.mulf %165, %164 : vector<16x128xf32>
    %167 = math.tanh %166 : vector<16x128xf32>
    %cst_58 = arith.constant 5.000000e-01 : f32
    %168 = vector.broadcast %cst_58 : f32 to vector<16x128xf32>
    %169 = arith.mulf %168, %167 : vector<16x128xf32>
    %cst_59 = arith.constant 5.000000e-01 : f32
    %170 = vector.broadcast %cst_59 : f32 to vector<16x128xf32>
    %171 = arith.addf %169, %170 : vector<16x128xf32>
    %172 = vector.extract_strided_slice %160 {offsets = [0, 128], sizes = [16, 128], strides = [1, 1]} : vector<16x384xf32> to vector<16x128xf32>
    %173 = vector.extract_strided_slice %161 {offsets = [0, 128], sizes = [16, 128], strides = [1, 1]} : vector<16x384xf32> to vector<16x128xf32>
    %174 = arith.addf %172, %173 : vector<16x128xf32>
    %cst_60 = arith.constant 5.000000e-01 : f32
    %175 = vector.broadcast %cst_60 : f32 to vector<16x128xf32>
    %176 = arith.mulf %175, %174 : vector<16x128xf32>
    %177 = math.tanh %176 : vector<16x128xf32>
    %cst_61 = arith.constant 5.000000e-01 : f32
    %178 = vector.broadcast %cst_61 : f32 to vector<16x128xf32>
    %179 = arith.mulf %178, %177 : vector<16x128xf32>
    %cst_62 = arith.constant 5.000000e-01 : f32
    %180 = vector.broadcast %cst_62 : f32 to vector<16x128xf32>
    %181 = arith.addf %179, %180 : vector<16x128xf32>
    %182 = vector.extract_strided_slice %160 {offsets = [0, 256], sizes = [16, 128], strides = [1, 1]} : vector<16x384xf32> to vector<16x128xf32>
    %183 = vector.extract_strided_slice %161 {offsets = [0, 256], sizes = [16, 128], strides = [1, 1]} : vector<16x384xf32> to vector<16x128xf32>
    %184 = vector.broadcast %5 : vector<1x128xf32> to vector<16x128xf32>
    %185 = arith.addf %183, %184 : vector<16x128xf32>
    %186 = arith.mulf %171, %185 : vector<16x128xf32>
    %187 = arith.addf %182, %186 : vector<16x128xf32>
    %188 = math.tanh %187 : vector<16x128xf32>
    %cst_63 = arith.constant 1.000000e+00 : f32
    %189 = vector.broadcast %cst_63 : f32 to vector<16x128xf32>
    %190 = arith.subf %189, %181 : vector<16x128xf32>
    %191 = arith.mulf %190, %188 : vector<16x128xf32>
    %192 = arith.mulf %181, %159 : vector<16x128xf32>
    %193 = arith.addf %191, %192 : vector<16x128xf32>
    %c64_64 = arith.constant 64 : index
    %c0_65 = arith.constant 0 : index
    %194 = vector.load %arg4[%c64_64, %c0_65] : memref<96x1xf32, #tpu.memory_space<vmem>>, vector<16x1xf32>
    %195 = vector.broadcast %194 : vector<16x1xf32> to vector<16x128xf32>
    %196 = arith.mulf %195, %193 : vector<16x128xf32>
    %cst_66 = arith.constant 1.000000e+00 : f32
    %197 = vector.broadcast %cst_66 : f32 to vector<16x1xf32>
    %198 = arith.subf %197, %194 : vector<16x1xf32>
    %199 = vector.broadcast %198 : vector<16x1xf32> to vector<16x128xf32>
    %200 = arith.mulf %199, %159 : vector<16x128xf32>
    %201 = arith.addf %196, %200 : vector<16x128xf32>
    %c80 = arith.constant 80 : index
    %c0_67 = arith.constant 0 : index
    %202 = vector.load %arg6[%c80, %c0_67] : memref<96x384xf32, #tpu.memory_space<vmem>>, vector<16x384xf32>
    %cst_68 = arith.constant dense<0.000000e+00> : vector<16x384xf32>
    %203 = tpu.matmul %201, %4, %cst_68 {dimension_numbers = #tpu.dot_dimension_numbers<[1], [0], [0], [1], [0, 0, 1, 1], [], []>} : vector<16x128xf32>, vector<128x384xf32>, vector<16x384xf32> -> vector<16x384xf32>
    %204 = vector.extract_strided_slice %202 {offsets = [0, 0], sizes = [16, 128], strides = [1, 1]} : vector<16x384xf32> to vector<16x128xf32>
    %205 = vector.extract_strided_slice %203 {offsets = [0, 0], sizes = [16, 128], strides = [1, 1]} : vector<16x384xf32> to vector<16x128xf32>
    %206 = arith.addf %204, %205 : vector<16x128xf32>
    %cst_69 = arith.constant 5.000000e-01 : f32
    %207 = vector.broadcast %cst_69 : f32 to vector<16x128xf32>
    %208 = arith.mulf %207, %206 : vector<16x128xf32>
    %209 = math.tanh %208 : vector<16x128xf32>
    %cst_70 = arith.constant 5.000000e-01 : f32
    %210 = vector.broadcast %cst_70 : f32 to vector<16x128xf32>
    %211 = arith.mulf %210, %209 : vector<16x128xf32>
    %cst_71 = arith.constant 5.000000e-01 : f32
    %212 = vector.broadcast %cst_71 : f32 to vector<16x128xf32>
    %213 = arith.addf %211, %212 : vector<16x128xf32>
    %214 = vector.extract_strided_slice %202 {offsets = [0, 128], sizes = [16, 128], strides = [1, 1]} : vector<16x384xf32> to vector<16x128xf32>
    %215 = vector.extract_strided_slice %203 {offsets = [0, 128], sizes = [16, 128], strides = [1, 1]} : vector<16x384xf32> to vector<16x128xf32>
    %216 = arith.addf %214, %215 : vector<16x128xf32>
    %cst_72 = arith.constant 5.000000e-01 : f32
    %217 = vector.broadcast %cst_72 : f32 to vector<16x128xf32>
    %218 = arith.mulf %217, %216 : vector<16x128xf32>
    %219 = math.tanh %218 : vector<16x128xf32>
    %cst_73 = arith.constant 5.000000e-01 : f32
    %220 = vector.broadcast %cst_73 : f32 to vector<16x128xf32>
    %221 = arith.mulf %220, %219 : vector<16x128xf32>
    %cst_74 = arith.constant 5.000000e-01 : f32
    %222 = vector.broadcast %cst_74 : f32 to vector<16x128xf32>
    %223 = arith.addf %221, %222 : vector<16x128xf32>
    %224 = vector.extract_strided_slice %202 {offsets = [0, 256], sizes = [16, 128], strides = [1, 1]} : vector<16x384xf32> to vector<16x128xf32>
    %225 = vector.extract_strided_slice %203 {offsets = [0, 256], sizes = [16, 128], strides = [1, 1]} : vector<16x384xf32> to vector<16x128xf32>
    %226 = vector.broadcast %5 : vector<1x128xf32> to vector<16x128xf32>
    %227 = arith.addf %225, %226 : vector<16x128xf32>
    %228 = arith.mulf %213, %227 : vector<16x128xf32>
    %229 = arith.addf %224, %228 : vector<16x128xf32>
    %230 = math.tanh %229 : vector<16x128xf32>
    %cst_75 = arith.constant 1.000000e+00 : f32
    %231 = vector.broadcast %cst_75 : f32 to vector<16x128xf32>
    %232 = arith.subf %231, %223 : vector<16x128xf32>
    %233 = arith.mulf %232, %230 : vector<16x128xf32>
    %234 = arith.mulf %223, %201 : vector<16x128xf32>
    %235 = arith.addf %233, %234 : vector<16x128xf32>
    %c80_76 = arith.constant 80 : index
    %c0_77 = arith.constant 0 : index
    %236 = vector.load %arg4[%c80_76, %c0_77] : memref<96x1xf32, #tpu.memory_space<vmem>>, vector<16x1xf32>
    %237 = vector.broadcast %236 : vector<16x1xf32> to vector<16x128xf32>
    %238 = arith.mulf %237, %235 : vector<16x128xf32>
    %cst_78 = arith.constant 1.000000e+00 : f32
    %239 = vector.broadcast %cst_78 : f32 to vector<16x1xf32>
    %240 = arith.subf %239, %236 : vector<16x1xf32>
    %241 = vector.broadcast %240 : vector<16x1xf32> to vector<16x128xf32>
    %242 = arith.mulf %241, %201 : vector<16x128xf32>
    %243 = arith.addf %238, %242 : vector<16x128xf32>
    %c0_79 = arith.constant 0 : index
    %c0_80 = arith.constant 0 : index
    %244 = vector.load %arg3[%c0_79, %c0_80] : memref<147x128xf32, #tpu.memory_space<vmem>>, vector<128x128xf32>
    %c128 = arith.constant 128 : index
    %c0_81 = arith.constant 0 : index
    %245 = vector.load %arg3[%c128, %c0_81] : memref<147x128xf32, #tpu.memory_space<vmem>>, vector<16x128xf32>
    %c144 = arith.constant 144 : index
    %c0_82 = arith.constant 0 : index
    %246 = vector.load %arg3[%c144, %c0_82] : memref<147x128xf32, #tpu.memory_space<vmem>>, vector<2x16xf32>
    %c146 = arith.constant 146 : index
    %c0_83 = arith.constant 0 : index
    %247 = vector.load %arg3[%c146, %c0_83] : memref<147x128xf32, #tpu.memory_space<vmem>>, vector<1x128xf32>
    %cst_84 = arith.constant dense<0.000000e+00> : vector<16x128xf32>
    %248 = tpu.matmul %243, %244, %cst_84 {dimension_numbers = #tpu.dot_dimension_numbers<[1], [0], [0], [1], [0, 0, 1, 1], [], []>} : vector<16x128xf32>, vector<128x128xf32>, vector<16x128xf32> -> vector<16x128xf32>
    %249 = arith.mulf %248, %245 : vector<16x128xf32>
    %cst_85 = arith.constant dense<0.000000e+00> : vector<2x128xf32>
    %250 = tpu.matmul %246, %249, %cst_85 {dimension_numbers = #tpu.dot_dimension_numbers<[1], [0], [0], [1], [0, 0, 1, 1], [], []>} : vector<2x16xf32>, vector<16x128xf32>, vector<2x128xf32> -> vector<2x128xf32>
    %251 = vector.broadcast %247 : vector<1x128xf32> to vector<2x128xf32>
    %252 = arith.addf %250, %251 : vector<2x128xf32>
    %c0_86 = arith.constant 0 : index
    %c0_87 = arith.constant 0 : index
    %253 = vector.load %arg5[%c0_86, %c0_87] : memref<2x128xf32, #tpu.memory_space<vmem>>, vector<2x128xf32>
    tpu.vector_store %arg5[%c0_86, %c0_87], %252 {strides = array<i32>} : memref<2x128xf32, #tpu.memory_space<vmem>>, vector<2x128xf32>,
    return
  }
}

</mosaic_0001>

<bundles_post_ra>
// kernel: tpu_custom_call.1
= control target key start
LH: loop header
LB: loop body
LE: loop exit
PB: predicated region body
PF: predicated region fallthrough
CT: control target
= control target key end

     0   :  { %10 = vsyncpa [#allocation4], 0  ;;  %s2117_s0 = inlined_call_operand.vmem [shape: f32[96,20], index: 0, kind: input, shape index: {}]   ;;  %s2118_s1 = inlined_call_operand.hbm [shape: f32[20,384], index: 1, kind: input, shape index: {}]   ;;  %s2119_s2 = inlined_call_operand.hbm [shape: f32[128,384], index: 2, kind: input, shape index: {}]   ;;  %s2120_s3 = inlined_call_operand.vmem [shape: f32[147,128], index: 3, kind: input, shape index: {}]   ;;  %s2121_s4 = inlined_call_operand.vmem [shape: f32[96,1], index: 4, kind: input, shape index: {}]   ;;  %s2122_s5 = inlined_call_operand.hbm [shape: f32[2,128], index: 5, kind: output, shape index: {}]  }
   0x1   :  { %11 = vsyncpa [#allocation7], 0 }
   0x2   :  { %12 = vsyncpa [#allocation5], 0  ;;  %s19_s20 = sshll.u32 %s2118_s1, 4  ;;  %s1409_s21 = smov [#allocation3]   ;;  %s20_s20 = int_to_ptr.hbm [resolvable:$true] %s19_s20 }
   0x3   :  { %s21_s22 = sshll.u32 %s1409_s21, 4  ;;  %s32_s25 = sshll.u32 %s2119_s2, 4  ;;  %s22_s22 = int_to_ptr.vmem [resolvable:$true] %s21_s22  ;;  %s33_s25 = int_to_ptr.hbm [resolvable:$true] %s32_s25 }
   0x4   :  { %s1410_s26 = smov 384   ;;  %s1411_s27 = smov 24  }
   0x5   :  { %27 = dma.hbm_to_vmem [thread:$0]  %s20_s20, 1152, %s22_s22, [#allocation4], %s1410_s26, %s1410_s26, %s1411_s27  }
   0x6   :  { %s1412_s28 = smov [#allocation6]  }
   0x7   :  { %s34_s29 = sshll.u32 %s1412_s28, 4  ;;  %s35_s29 = int_to_ptr.vmem [resolvable:$true] %s34_s29 }
   0x8   :  { %40 = dma.hbm_to_vmem [thread:$0]  %s33_s25, 6144, %s35_s29, [#allocation7], %s1410_s26, %s1410_s26, %s1411_s27  }
   0x9   :  { %1403 = dma.done.wait [#allocation4], 1152  }
   0xa   :  { %1404 = vsyncadd [#allocation4], 4294966144 }
   0xb   :  { %1405 = dma.done.wait [#allocation7], 6144  }
   0xc   :  { %1406 = vsyncadd [#allocation7], 4294961152  ;;  %v1413_v0 = vmov 0   ;;  %vm111_vm0 = vcmask 1043456   ;;  %v393_v1 = vld [vmem:[%s2121_s4] sm:$0xff]  ;;  %v68_v3 = vld [vmem:[#allocation3 + $0x18] sm:$0xff] }
   0xd   :  { %1254 = vset.pattern.permute.xlu0 %v1413_v0  ;;  %1255 = vset.pattern.permute.xlu1 %v1413_v0  ;;  %v71_v2 = vld [vmem:[#allocation3 + $0x30] sm:$0xf]  ;;  %v65_v4 = vld [vmem:[#allocation3] sm:$0xff]  ;;  %vm74_vm1 = vcmask 162816   ;;  %v72_v6 = vld [vmem:[#allocation3 + $0x38] sm:$0xf] }
   0xe   :  { %1256 = vset.pattern.permute.xlu2 %v1413_v0  ;;  %401 = vperm.xlu0 %1254, %v393_v1   ;;  %v1459_v5 = vld [vmem:[%s2117_s0 + $0x50] sm:$0xff]  ;;  %v53_v7 = vld [vmem:[%s2117_s0] sm:$0xff]  ;;  %v394_v10 = vld [vmem:[%s2121_s4 + $0x8] sm:$0xff]  ;;  %vm1162_vm2 = vcmask 130048   ;;  %s1414_s6 = smov [#allocation8]   ;;  %s1194_s10 = sshll.u32 %s2122_s5, 4  ;;  %s1195_s10 = int_to_ptr.hbm [resolvable:$true] %s1194_s10 }
   0xf   :  { %1245 = vmatpush.msk.msra.mxu2 %vm111_vm0, %v71_v2  ;;  %1205 = vmatpush.msk.msra.mxu0 %vm111_vm0, %v71_v2  ;;  %v73_v8 = vld [vmem:[#allocation3 + $0x40] sm:$0xf]  ;;  %v70_v11 = vld [vmem:[#allocation3 + $0x28] sm:$0xff]  ;;  %v67_v13 = vld [vmem:[#allocation3 + $0x10] sm:$0xff]  ;;  %s1192_s7 = sshll.u32 %s1414_s6, 4  ;;  %s1193_s7 = int_to_ptr.vmem [resolvable:$true] %s1192_s7 }
  0x10   :  { %1218 = vmatpush.msk.msra.mxu1 %vm111_vm0, %v72_v6  ;;  %v69_v9 = vld [vmem:[#allocation3 + $0x20] sm:$0xff]  ;;  %v66_v12 = vld [vmem:[#allocation3 + $0x8] sm:$0xff]  ;;  %v522_v14 = vld [vmem:[%s2121_s4 + $0x10] sm:$0xff] }
  0x11   :  { %1246 = vmatpush.msra.mxu2 %v68_v3  ;;  %135 = vmatpush.msra.mxu0 %v68_v3  ;;  %v1478_v15 = vld [vmem:[%s2117_s0 + $0x58] sm:$0xff]  ;;  %v54_v16 = vld [vmem:[%s2117_s0 + $0x8] sm:$0xff]  ;;  %v663_v17 = vld [vmem:[%s2121_s4 + $0x20] sm:$0xff]  ;;  %v536_v18 = vsub.f32 1.0, %v522_v14 }
  0x12   :  { %188 = vmatpush.msra.mxu1 %v69_v9  ;;  %526 = vperm.xlu1 %1255, %v522_v14   ;;  %v664_v19 = vld [vmem:[%s2121_s4 + $0x28] sm:$0xff]  ;;  %v677_v21 = vsub.f32 1.0, %v663_v17  ;;  %v523_v22 = vld [vmem:[%s2121_s4 + $0x18] sm:$0xff]  ;;  %v1498_v23 = vld [vmem:[#allocation6 + $0x168] sm:$0xff] }
  0x13   :  { %1247 = vmatpush.msra.mxu2 %v65_v4  ;;  %136 = vmatpush.msra.mxu0 %v65_v4  ;;  %v678_v20 = vsub.f32 1.0, %v664_v19  ;;  %v1500_v24 = vld [vmem:[#allocation6 + $0x150] sm:$0xff]  ;;  %v1503_v25 = vld [vmem:[#allocation6 + $0x138] sm:$0xff]  ;;  %v1507_v26 = vld [vmem:[#allocation6 + $0x120] sm:$0xff]  ;;  %v537_v28 = vsub.f32 1.0, %v523_v22 }
  0x14   :  { %1216 = vmatmul.msk.f32.vlgmr.msra.gmra.mxu2 %vm74_vm1, %v1459_v5  ;;  %1206 = vmatmul.msk.f32.vlgmr.msra.gmra.mxu0 %vm74_vm1, %v53_v7  ;;  %v1514_v27 = vld [vmem:[%s2121_s4 + $0x38] sm:$0xff]  ;;  %v1517_v29 = vld [vmem:[#allocation6 + $0x108] sm:$0xff]  ;;  %v1526_v30 = vld [vmem:[%s2121_s4 + $0x40] sm:$0xff] }
  0x15   :  { %1231 = vmatpush.msk.msrb.mxu2 %vm111_vm0, %v73_v8  ;;  %189 = vmatpush.msra.mxu1 %v66_v12  ;;  %v959_v31 = vsub.f32 1.0, %v1526_v30  ;;  %v1534_v32 = vld [vmem:[%s2121_s4 + $0x50] sm:$0xff]  ;;  %v1540_v33 = vld [vmem:[%s2121_s4 + $0x58] sm:$0xff]  ;;  %v1545_v36 = vld [vmem:[#allocation6 + $0xd8] sm:$0xff] }
  0x16   :  { %406 = vperm.xlu0 %1254, %v394_v10   ;;  %1219 = vmatmul.msk.f32.vlgmr.msra.gmra.mxu1 %vm74_vm1, %v53_v7  ;;  %v1101_v34 = vsub.f32 1.0, %v1540_v33  ;;  %v1543_v35 = vld [vmem:[#allocation6 + $0xf0] sm:$0xff]  ;;  %v1549_v37 = vld [vmem:[#allocation6 + $0xc0] sm:$0xff]  ;;  %v1553_v38 = vld [vmem:[#allocation6 + $0xa8] sm:$0xff] }
  0x17   :  { %241 = vmatpush.msrb.mxu2 %v70_v11  ;;  %531 = vperm.xlu2 %1256, %v523_v22   ;;  %v1559_v39 = vld [vmem:[#allocation6 + $0x90] sm:$0xff]  ;;  %v1561_v40 = vld [vmem:[#allocation6 + $0x78] sm:$0xff]  ;;  %v1565_v41 = vld [vmem:[#allocation6 + $0x60] sm:$0xff] }
  0x18   :  { %417 = vmatpush.msra.mxu3 %v1498_v23  ;;  %558 = vmatpush.msrb.mxu0 %v1498_v23  ;;  %v1569_v42 = vld [vmem:[#allocation6 + $0x48] sm:$0xff]  ;;  %v1575_v43 = vld [vmem:[#allocation6 + $0x30] sm:$0xff]  ;;  %v1577_v44 = vld [vmem:[#allocation6 + $0x18] sm:$0xff] }
  0x19   :  { %242 = vmatpush.msrb.mxu2 %v67_v13  ;;  %2137 = vst [vmem:[#allocation12_spill] sm:$0xff] %v1569_v42  ;;  %v1581_v45 = vld [vmem:[#allocation6] sm:$0xff]  ;;  %v1586_v46 = vld [vmem:[#allocation6 + $0x170] sm:$0xff]  ;;  %v1591_v47 = vld [vmem:[#allocation6 + $0x158] sm:$0xff] }
  0x1a   :  { %540 = vperm.xlu1 %1255, %v536_v18   ;;  %418 = vmatpush.msra.mxu3 %v1500_v24  ;;  %2138 = vst [vmem:[#allocation13_spill] sm:$0xff] %v1575_v43  ;;  %v1596_v48 = vld [vmem:[#allocation6 + $0x140] sm:$0xff]  ;;  %v1601_v49 = vld [vmem:[#allocation6 + $0x128] sm:$0xff]  ;;  %v1606_v50 = vld [vmem:[#allocation6 + $0x110] sm:$0xff] }
  0x1b   :  { %559 = vmatpush.msrb.mxu0 %v1500_v24  ;;  %2139 = vst [vmem:[#allocation14_spill] sm:$0xff] %v1577_v44  ;;  %581 = vmatpush.msrb.mxu1 %v1586_v46  ;;  %v1611_v51 = vld [vmem:[#allocation6 + $0xf8] sm:$0xff]  ;;  %v1616_v52 = vld [vmem:[#allocation6 + $0xe0] sm:$0xff]  ;;  %v1621_v53 = vld [vmem:[#allocation6 + $0xc8] sm:$0xff] }
  0x1c   :  { %1217 = vmatmul.msk.f32.gmra.mxu2 %vm74_vm1, %v1478_v15  ;;  %1207 = vmatmul.msk.f32.gmra.mxu0 %vm74_vm1, %v54_v16  ;;  %2140 = vst [vmem:[#allocation15_spill] sm:$0xff] %v1581_v45  ;;  %v1626_v54 = vld [vmem:[#allocation6 + $0xb0] sm:$0xff]  ;;  %v1631_v55 = vld [vmem:[#allocation6 + $0x98] sm:$0xff]  ;;  %v1636_v56 = vld [vmem:[#allocation6 + $0x80] sm:$0xff] }
  0x1d   :  { %419 = vmatpush.msra.mxu3 %v1503_v25  ;;  %560 = vmatpush.msrb.mxu0 %v1503_v25  ;;  %v1641_v57 = vld [vmem:[#allocation6 + $0x68] sm:$0xff]  ;;  %v1646_v58 = vld [vmem:[#allocation6 + $0x50] sm:$0xff]  ;;  %v1651_v59 = vld [vmem:[#allocation6 + $0x38] sm:$0xff] }
  0x1e   :  { %667 = vperm.xlu0 %1254, %v663_v17   ;;  %1220 = vmatmul.msk.f32.gmra.mxu1 %vm74_vm1, %v54_v16  ;;  %2141 = vst [vmem:[#allocation16_spill] sm:$0xff] %v1646_v58  ;;  %v1656_v61 = vld [vmem:[#allocation6 + $0x20] sm:$0xff]  ;;  %v1661_v63 = vld [vmem:[#allocation6 + $0x8] sm:$0xff]  ;;  %v1665_v0 = vld [vmem:[#allocation6 + $0x178] sm:$0xff] }
  0x1f   :  { %420 = vmatpush.msra.mxu3 %v1507_v26  ;;  %561 = vmatpush.msrb.mxu0 %v1507_v26  ;;  %2142 = vst [vmem:[#allocation17_spill] sm:$0xff] %v1651_v59  ;;  %v1672_v3 = vld [vmem:[#allocation6 + $0x160] sm:$0xff]  ;;  %v1677_v6 = vld [vmem:[#allocation6 + $0x148] sm:$0xff]  ;;  %v1685_v11 = vld [vmem:[#allocation6 + $0x130] sm:$0xff] }
  0x20   :  { %545 = vperm.xlu2 %1256, %v537_v28   ;;  %582 = vmatpush.msrb.mxu1 %v1591_v47  ;;  %2143 = vst [vmem:[#allocation18_spill] sm:$0xff] %v1656_v61  ;;  %v55_v8 = vld [vmem:[%s2117_s0 + $0x10] sm:$0xff]  ;;  %v1690_v13 = vld [vmem:[#allocation6 + $0x118] sm:$0xff]  ;;  %v1696_v17 = vld [vmem:[#allocation6 + $0x100] sm:$0xff] }
  0x21   :  { %421 = vmatpush.msra.mxu3 %v1517_v29  ;;  %562 = vmatpush.msrb.mxu0 %v1517_v29  ;;  %2144 = vst [vmem:[#allocation19_spill] sm:$0xff] %v1661_v63  ;;  %v56_v28 = vld [vmem:[%s2117_s0 + $0x18] sm:$0xff] }
  0x22   :  { %681 = vperm.xlu1 %1255, %v677_v21   ;;  %583 = vmatpush.msrb.mxu1 %v1596_v48  ;;  %v1702_v21 = vld [vmem:[#allocation6 + $0xe8] sm:$0xff] }
  0x23   :  { %422 = vmatpush.msra.mxu3 %v1543_v35  ;;  %563 = vmatpush.msrb.mxu0 %v1543_v35 }
  0x24   :  { %1232 = vmatmul.msk.f32.vlgmr.msrb.gmra.mxu2 %vm74_vm1, %v53_v7  ;;  %584 = vmatpush.msrb.mxu1 %v1601_v49 }
  0x25   :  { %423 = vmatpush.msra.mxu3 %v1545_v36  ;;  %564 = vmatpush.msrb.mxu0 %v1545_v36 }
  0x26   :  { %686 = vperm.xlu0 %1254, %v678_v20   ;;  %585 = vmatpush.msrb.mxu1 %v1606_v50  ;;  %v1700_v20 = vld [vmem:[#allocation3 + $0x33] ss:$0 sm:$0xff] }
  0x27   :  { %424 = vmatpush.msra.mxu3 %v1549_v37  ;;  %565 = vmatpush.msrb.mxu0 %v1549_v37  ;;  %2147 = vst [vmem:[#allocation22_spill] sm:$0xff] %v1700_v20 }
  0x28   :  { %672 = vperm.xlu2 %1256, %v664_v19   ;;  %586 = vmatpush.msrb.mxu1 %v1611_v51 }
  0x29   :  { %425 = vmatpush.msra.mxu3 %v1553_v38  ;;  %566 = vmatpush.msrb.mxu0 %v1553_v38 }
  0x2a   :  { %587 = vmatpush.msrb.mxu1 %v1616_v52  ;;  %604 = vmatpush.msra.mxu2 %v1665_v0 }
  0x2b   :  { %426 = vmatpush.msra.mxu3 %v1559_v39  ;;  %567 = vmatpush.msrb.mxu0 %v1559_v39 }
  0x2c   :  { %1233 = vmatmul.msk.f32.gmra.mxu2 %vm74_vm1, %v54_v16  ;;  %588 = vmatpush.msrb.mxu1 %v1621_v53 }
  0x2d   :  { %427 = vmatpush.msra.mxu3 %v1561_v40  ;;  %568 = vmatpush.msrb.mxu0 %v1561_v40 }
  0x2e   :  { %813 = vperm.xlu0 %1254, %v1514_v27   ;;  %589 = vmatpush.msrb.mxu1 %v1626_v54 }
  0x2f   :  { %428 = vmatpush.msra.mxu3 %v1565_v41  ;;  %569 = vmatpush.msrb.mxu0 %v1565_v41 }
  0x30   :  { %590 = vmatpush.msrb.mxu1 %v1631_v55  ;;  %605 = vmatpush.msra.mxu2 %v1672_v3 }
  0x31   :  { %429 = vmatpush.msra.mxu3 %v1569_v42  ;;  %570 = vmatpush.msrb.mxu0 %v1569_v42 }
  0x32   :  { %591 = vmatpush.msrb.mxu1 %v1636_v56  ;;  %606 = vmatpush.msra.mxu2 %v1677_v6 }
  0x33   :  { %430 = vmatpush.msra.mxu3 %v1575_v43  ;;  %571 = vmatpush.msrb.mxu0 %v1575_v43 }
  0x34   :  { %592 = vmatpush.msrb.mxu1 %v1641_v57  ;;  %1208 = vmatmul.msk.f32.gmra.mxu0 %vm74_vm1, %v55_v8 }
  0x35   :  { %431 = vmatpush.msra.mxu3 %v1577_v44  ;;  %572 = vmatpush.msrb.mxu0 %v1577_v44 }
  0x36   :  { %963 = vperm.xlu0 %1254, %v959_v31   ;;  %593 = vmatpush.msrb.mxu1 %v1646_v58 }
  0x37   :  { %432 = vmatpush.msra.mxu3 %v1581_v45  ;;  %573 = vmatpush.msrb.mxu0 %v1581_v45 }
  0x38   :  { %594 = vmatpush.msrb.mxu1 %v1651_v59  ;;  %1234 = vmatmul.msk.f32.gmra.mxu2 %vm74_vm1, %v55_v8 }
  0x39   :  { %440 = vmatpush.msrb.mxu3 %v1586_v46  ;;  %722 = vmatpush.msra.mxu0 %v1586_v46 }
  0x3a   :  { %595 = vmatpush.msrb.mxu1 %v1656_v61  ;;  %607 = vmatpush.msra.mxu2 %v1685_v11 }
  0x3b   :  { %441 = vmatpush.msrb.mxu3 %v1591_v47  ;;  %723 = vmatpush.msra.mxu0 %v1591_v47 }
  0x3c   :  { %596 = vmatpush.msrb.mxu1 %v1661_v63  ;;  %608 = vmatpush.msra.mxu2 %v1690_v13 }
  0x3d   :  { %442 = vmatpush.msrb.mxu3 %v1596_v48  ;;  %724 = vmatpush.msra.mxu0 %v1596_v48 }
  0x3e   :  { %1090 = vperm.xlu0 %1254, %v1534_v32   ;;  %745 = vmatpush.msra.mxu1 %v1665_v0 }
  0x3f   :  { %443 = vmatpush.msrb.mxu3 %v1601_v49  ;;  %725 = vmatpush.msra.mxu0 %v1601_v49 }
  0x40   :  { %746 = vmatpush.msra.mxu1 %v1672_v3  ;;  %609 = vmatpush.msra.mxu2 %v1696_v17 }
  0x41   :  { %444 = vmatpush.msrb.mxu3 %v1606_v50  ;;  %726 = vmatpush.msra.mxu0 %v1606_v50 }
  0x42   :  { %747 = vmatpush.msra.mxu1 %v1677_v6  ;;  %1209 = vmatmul.msk.f32.gmra.mxu0 %vm74_vm1, %v56_v28 }
  0x43   :  { %445 = vmatpush.msrb.mxu3 %v1611_v51  ;;  %727 = vmatpush.msra.mxu0 %v1611_v51 }
  0x44   :  { %1221 = vmatmul.msk.f32.gmra.mxu1 %vm74_vm1, %v55_v8  ;;  %1235 = vmatmul.msk.f32.gmra.mxu2 %vm74_vm1, %v56_v28  ;;  %v1720_v8 = vld [vmem:[#allocation6 + $0xa0] sm:$0xff] }
  0x45   :  { %446 = vmatpush.msrb.mxu3 %v1616_v52  ;;  %728 = vmatpush.msra.mxu0 %v1616_v52 }
  0x46   :  { %1109 = vperm.xlu0 %1254, %v1101_v34   ;;  %748 = vmatpush.msra.mxu1 %v1685_v11  ;;  %v1710_v34 = vld [vmem:[#allocation6 + $0xd0] sm:$0xff] }
  0x47   :  { %447 = vmatpush.msrb.mxu3 %v1621_v53  ;;  %729 = vmatpush.msra.mxu0 %v1621_v53 }
  0x48   :  { %749 = vmatpush.msra.mxu1 %v1690_v13  ;;  %610 = vmatpush.msra.mxu2 %v1702_v21 }
  0x49   :  { %448 = vmatpush.msrb.mxu3 %v1626_v54  ;;  %730 = vmatpush.msra.mxu0 %v1626_v54 }
  0x4a   :  { %750 = vmatpush.msra.mxu1 %v1696_v17  ;;  %611 = vmatpush.msra.mxu2 %v1710_v34 }
  0x4b   :  { %449 = vmatpush.msrb.mxu3 %v1631_v55  ;;  %731 = vmatpush.msra.mxu0 %v1631_v55 }
  0x4c   :  { %751 = vmatpush.msra.mxu1 %v1702_v21 }
  0x4d   :  { %450 = vmatpush.msrb.mxu3 %v1636_v56  ;;  %732 = vmatpush.msra.mxu0 %v1636_v56 }
  0x4e   :  { %1222 = vmatmul.msk.f32.gmra.mxu1 %vm74_vm1, %v56_v28 }
  0x4f   :  { %451 = vmatpush.msrb.mxu3 %v1641_v57  ;;  %733 = vmatpush.msra.mxu0 %v1641_v57 }
  0x50   :  { %752 = vmatpush.msra.mxu1 %v1710_v34 }
  0x51   :  { %452 = vmatpush.msrb.mxu3 %v1646_v58  ;;  %734 = vmatpush.msra.mxu0 %v1646_v58 }
  0x53   :  { %453 = vmatpush.msrb.mxu3 %v1651_v59  ;;  %735 = vmatpush.msra.mxu0 %v1651_v59 }
  0x55   :  { %454 = vmatpush.msrb.mxu3 %v1656_v61  ;;  %736 = vmatpush.msra.mxu0 %v1656_v61 }
  0x57   :  { %455 = vmatpush.msrb.mxu3 %v1661_v63  ;;  %737 = vmatpush.msra.mxu0 %v1661_v63 }
  0x91   :  { %v138_v60 = vpop.f32.mrf.mxu0 }
  0x92   :  { %v371_v62 = vmul.f32 0.5, %v138_v60 }
  0x93   :  { %v191_v1 = vpop.f32.mrf.mxu1 }
  0x94   :  { %1258 = vtanh.f32 %v371_v62  ;;  %v379_v4 = vmul.f32 0.5, %v191_v1 }
  0x96   :  { %1260 = vtanh.f32 %v379_v4  ;;  %v1716_v4 = vld [vmem:[#allocation6 + $0xb8] sm:$0xff] }
  0x97   :  { %v1670_v2 = vpop.f32.mrf.mxu2  ;;  %753 = vmatpush.msra.mxu1 %v1716_v4  ;;  %612 = vmatpush.msra.mxu2 %v1716_v4 }
  0x98   :  { %2145 = vst [vmem:[#allocation20_spill] sm:$0xff] %v1670_v2 }
  0x99   :  { %v141_v7 = vpop.f32.mrf.mxu0  ;;  %754 = vmatpush.msra.mxu1 %v1720_v8  ;;  %613 = vmatpush.msra.mxu2 %v1720_v8 }
  0x9a   :  { %v1259_v9 = vpop.eup %1258  ;;  %v372_v10 = vmul.f32 0.5, %v141_v7 }
  0x9b   :  { %v375_v12 = vmul.f32 0.5, %v1259_v9  ;;  %v194_v14 = vpop.f32.mrf.mxu1 }
  0x9c   :  { %1262 = vtanh.f32 %v372_v10  ;;  %v380_v19 = vmul.f32 0.5, %v194_v14  ;;  %v1261_v22 = vpop.eup %1260  ;;  %v1724_v14 = vld [vmem:[#allocation6 + $0x88] sm:$0xff] }
  0x9d   :  { %v377_v18 = vadd.f32 0.5, %v375_v12  ;;  %v383_v1 = vmul.f32 0.5, %v1261_v22  ;;  %755 = vmatpush.msra.mxu1 %v1724_v14  ;;  %614 = vmatpush.msra.mxu2 %v1724_v14 }
  0x9e   :  { %1264 = vtanh.f32 %v380_v19  ;;  %v1728_v19 = vld [vmem:[#allocation6 + $0x70] sm:$0xff] }
  0x9f   :  { %v1694_v16 = vpop.f32.mrf.mxu2  ;;  %v387_v62 = vmul.f32 %v377_v18, %v1700_v20  ;;  %v385_v12 = vadd.f32 0.5, %v383_v1  ;;  %756 = vmatpush.msra.mxu1 %v1728_v19  ;;  %v1737_v1 = vld [vmem:[#allocation6 + $0x40] sm:$0xff]  ;;  %615 = vmatpush.msra.mxu2 %v1728_v19 }
  0xa0   :  { %2146 = vst [vmem:[#allocation21_spill] sm:$0xff] %v1694_v16 }
  0xa1   :  { %v395_v28 = vsub.f32 1.0, %v385_v12  ;;  %v1741_v12 = vld [vmem:[#allocation6 + $0x28] sm:$0xff] }
  0xa2   :  { %v1263_v31 = vpop.eup %1262  ;;  %2148 = vst [vmem:[#allocation23_spill] sm:$0xff] %v1741_v12 }
  0xa3   :  { %v376_v60 = vmul.f32 0.5, %v1263_v31 }
  0xa4   :  { %v1265_v18 = vpop.eup %1264 }
  0xa5   :  { %v378_v9 = vadd.f32 0.5, %v376_v60  ;;  %v384_v31 = vmul.f32 0.5, %v1265_v18  ;;  %v1733_v60 = vld [vmem:[#allocation6 + $0x58] sm:$0xff] }
  0xa6   :  { %757 = vmatpush.msra.mxu1 %v1733_v60  ;;  %616 = vmatpush.msra.mxu2 %v1733_v60 }
  0xa7   :  { %v244_v7 = vpop.f32.mrf.mxu2  ;;  %v388_v22 = vmul.f32 %v378_v9, %v1700_v20  ;;  %v386_v2 = vadd.f32 0.5, %v384_v31  ;;  %v1747_v20 = vld [vmem:[#allocation6 + $0x10] sm:$0xff] }
  0xa8   :  { %v389_v10 = vadd.f32 %v387_v62, %v244_v7  ;;  %758 = vmatpush.msra.mxu1 %v1737_v1  ;;  %2149 = vst [vmem:[#allocation24_spill] sm:$0xff] %v1747_v20  ;;  %617 = vmatpush.msra.mxu2 %v1737_v1 }
  0xaa   :  { %1266 = vtanh.f32 %v389_v10  ;;  %v402_v10 = vpop.permute.xlu0 %401  ;;  %759 = vmatpush.msra.mxu1 %v1741_v12  ;;  %618 = vmatpush.msra.mxu2 %v1741_v12 }
  0xac   :  { %760 = vmatpush.msra.mxu1 %v1747_v20  ;;  %619 = vmatpush.msra.mxu2 %v1747_v20 }
  0xae   :  { %840 = vmatpush.msrb.mxu2 %v1498_v23 }
  0xaf   :  { %v247_v62 = vpop.f32.mrf.mxu2 }
  0xb0   :  { %v1267_v7 = vpop.eup %1266  ;;  %v390_v16 = vadd.f32 %v388_v22, %v247_v62  ;;  %v396_v22 = vsub.f32 1.0, %v386_v2  ;;  %v819_v2 = vsub.f32 1.0, %v1514_v27  ;;  %841 = vmatpush.msrb.mxu2 %v1500_v24  ;;  %v946_v27 = vld [vmem:[%s2121_s4 + $0x48] sm:$0xff] }
  0xb1   :  { %v397_v9 = vmul.f32 %v1267_v7, %v395_v28  ;;  %v804_v28 = vld [vmem:[%s2121_s4 + $0x30] sm:$0xff] }
  0xb2   :  { %1268 = vtanh.f32 %v390_v16  ;;  %v818_v16 = vsub.f32 1.0, %v804_v28  ;;  %808 = vperm.xlu1 %1255, %v804_v28   ;;  %v407_v7 = vpop.permute.xlu0 %406  ;;  %842 = vmatpush.msrb.mxu2 %v1503_v25  ;;  %v58_v28 = vld [vmem:[%s2117_s0 + $0x28] sm:$0xff] }
  0xb3   :  { %v1745_v18 = vmul.f32 %v402_v10, %v397_v9  ;;  %v57_v9 = vld [vmem:[%s2117_s0 + $0x20] sm:$0xff] }
  0xb4   :  { %822 = vperm.xlu2 %1256, %v818_v16   ;;  %1223 = vmatmul.msk.f32.gmra.mxu1 %vm74_vm1, %v57_v9  ;;  %v61_v16 = vld [vmem:[%s2117_s0 + $0x40] sm:$0xff] }
  0xb5   :  { %433 = vmatmul.f32.vlgmr.msra.gmra.mxu3 %v1745_v18  ;;  %1236 = vmatmul.msk.f32.gmra.mxu2 %vm74_vm1, %v57_v9 }
  0xb6   :  { %463 = vmatpush.msra.mxu3 %v1665_v0  ;;  %1210 = vmatmul.msk.f32.gmra.mxu0 %vm74_vm1, %v57_v9 }
  0xb7   :  { %843 = vmatpush.msrb.mxu2 %v1507_v26 }
  0xb8   :  { %v1269_v31 = vpop.eup %1268  ;;  %464 = vmatpush.msra.mxu3 %v1672_v3 }
  0xb9   :  { %v398_v62 = vmul.f32 %v1269_v31, %v396_v22  ;;  %844 = vmatpush.msrb.mxu2 %v1517_v29  ;;  %v960_v22 = vsub.f32 1.0, %v946_v27  ;;  %v62_v31 = vld [vmem:[%s2117_s0 + $0x48] sm:$0xff] }
  0xba   :  { %465 = vmatpush.msra.mxu3 %v1677_v6  ;;  %827 = vperm.xlu1 %1255, %v819_v2   ;;  %v144_v2 = vpop.f32.mrf.mxu0 }
  0xbb   :  { %v1762_v10 = vmul.f32 %v407_v7, %v398_v62  ;;  %845 = vmatpush.msrb.mxu2 %v1543_v35 }
  0xbc   :  { %466 = vmatpush.msra.mxu3 %v1685_v11  ;;  %949 = vperm.xlu2 %1256, %v1526_v30   ;;  %v1100_v30 = vsub.f32 1.0, %v1534_v32  ;;  %v59_v32 = vld [vmem:[%s2117_s0 + $0x30] sm:$0xff] }
  0xbd   :  { %436 = vmatmul.f32.gmra.mxu3 %v1762_v10  ;;  %1224 = vmatmul.msk.f32.gmra.mxu1 %vm74_vm1, %v58_v28 }
  0xbe   :  { %467 = vmatpush.msra.mxu3 %v1690_v13  ;;  %1237 = vmatmul.msk.f32.gmra.mxu2 %vm74_vm1, %v58_v28 }
  0xbf   :  { %1211 = vmatmul.msk.f32.gmra.mxu0 %vm74_vm1, %v58_v28  ;;  %846 = vmatpush.msrb.mxu2 %v1545_v36 }
  0xc0   :  { %468 = vmatpush.msra.mxu3 %v1696_v17 }
  0xc1   :  { %847 = vmatpush.msrb.mxu2 %v1549_v37 }
  0xc2   :  { %469 = vmatpush.msra.mxu3 %v1702_v21  ;;  %954 = vperm.xlu1 %1255, %v946_v27   ;;  %v197_v27 = vpop.f32.mrf.mxu1 }
  0xc3   :  { %848 = vmatpush.msrb.mxu2 %v1553_v38 }
  0xc4   :  { %470 = vmatpush.msra.mxu3 %v1710_v34  ;;  %968 = vperm.xlu2 %1256, %v960_v22  }
  0xc5   :  { %456 = vmatmul.f32.vlgmr.msrb.gmra.mxu3 %v1745_v18  ;;  %849 = vmatpush.msrb.mxu2 %v1559_v39 }
  0xc6   :  { %471 = vmatpush.msra.mxu3 %v1716_v4  ;;  %1225 = vmatmul.msk.f32.gmra.mxu1 %vm74_vm1, %v59_v32 }
  0xc7   :  { %850 = vmatpush.msrb.mxu2 %v1561_v40  ;;  %1212 = vmatmul.msk.f32.gmra.mxu0 %vm74_vm1, %v59_v32 }
  0xc8   :  { %472 = vmatpush.msra.mxu3 %v1720_v8  ;;  %1238 = vmatmul.msk.f32.gmra.mxu2 %vm74_vm1, %v59_v32 }
  0xc9   :  { %851 = vmatpush.msrb.mxu2 %v1565_v41 }
  0xca   :  { %473 = vmatpush.msra.mxu3 %v1724_v14  ;;  %1104 = vperm.xlu1 %1255, %v1100_v30   ;;  %v147_v30 = vpop.f32.mrf.mxu0 }
  0xcb   :  { %852 = vmatpush.msrb.mxu2 %v1569_v42 }
  0xcc   :  { %474 = vmatpush.msra.mxu3 %v1728_v19  ;;  %1095 = vperm.xlu2 %1256, %v1540_v33   ;;  %v60_v33 = vld [vmem:[%s2117_s0 + $0x38] sm:$0xff] }
  0xcd   :  { %459 = vmatmul.f32.gmra.mxu3 %v1762_v10  ;;  %853 = vmatpush.msrb.mxu2 %v1575_v43 }
  0xce   :  { %475 = vmatpush.msra.mxu3 %v1733_v60  ;;  %1226 = vmatmul.msk.f32.gmra.mxu1 %vm74_vm1, %v60_v33 }
  0xcf   :  { %854 = vmatpush.msrb.mxu2 %v1577_v44  ;;  %1213 = vmatmul.msk.f32.gmra.mxu0 %vm74_vm1, %v60_v33 }
  0xd0   :  { %476 = vmatpush.msra.mxu3 %v1737_v1  ;;  %1239 = vmatmul.msk.f32.gmra.mxu2 %vm74_vm1, %v60_v33 }
  0xd1   :  { %855 = vmatpush.msrb.mxu2 %v1581_v45 }
  0xd2   :  { %477 = vmatpush.msra.mxu3 %v1741_v12 }
  0xd4   :  { %478 = vmatpush.msra.mxu3 %v1747_v20  ;;  %v250_v20 = vpop.f32.mrf.mxu2 }
  0xd5   :  { %479 = vmatmul.f32.vlgmr.msra.gmra.mxu3 %v1745_v18 }
  0xd6   :  { %699 = vmatpush.msrb.mxu3 %v1498_v23  ;;  %1227 = vmatmul.msk.f32.gmra.mxu1 %vm74_vm1, %v61_v16 }
  0xd7   :  { %1214 = vmatmul.msk.f32.gmra.mxu0 %vm74_vm1, %v61_v16 }
  0xd8   :  { %700 = vmatpush.msrb.mxu3 %v1500_v24  ;;  %1240 = vmatmul.msk.f32.gmra.mxu2 %vm74_vm1, %v61_v16 }
  0xda   :  { %701 = vmatpush.msrb.mxu3 %v1503_v25 }
  0xdc   :  { %702 = vmatpush.msrb.mxu3 %v1507_v26 }
  0xdd   :  { %482 = vmatmul.f32.gmra.mxu3 %v1762_v10 }
  0xde   :  { %703 = vmatpush.msrb.mxu3 %v1517_v29  ;;  %1228 = vmatmul.msk.f32.gmra.mxu1 %vm74_vm1, %v62_v31 }
  0xdf   :  { %1215 = vmatmul.msk.f32.gmra.mxu0 %vm74_vm1, %v62_v31 }
  0xe0   :  { %704 = vmatpush.msrb.mxu3 %v1543_v35  ;;  %1241 = vmatmul.msk.f32.gmra.mxu2 %vm74_vm1, %v62_v31 }
  0xe2   :  { %705 = vmatpush.msrb.mxu3 %v1545_v36 }
  0xe4   :  { %706 = vmatpush.msrb.mxu3 %v1549_v37 }
  0xe6   :  { %707 = vmatpush.msrb.mxu3 %v1553_v38  ;;  %1229 = vmatmul.msk.f32.gmra.mxu1 %vm74_vm1, %v1459_v5 }
  0xe8   :  { %708 = vmatpush.msrb.mxu3 %v1559_v39  ;;  %1242 = vmatmul.msk.f32.gmra.mxu2 %vm74_vm1, %v1459_v5 }
  0xea   :  { %709 = vmatpush.msrb.mxu3 %v1561_v40 }
  0xec   :  { %710 = vmatpush.msrb.mxu3 %v1565_v41 }
  0xee   :  { %711 = vmatpush.msrb.mxu3 %v1569_v42  ;;  %1230 = vmatmul.msk.f32.gmra.mxu1 %vm74_vm1, %v1478_v15 }
  0xf0   :  { %712 = vmatpush.msrb.mxu3 %v1575_v43  ;;  %1243 = vmatmul.msk.f32.gmra.mxu2 %vm74_vm1, %v1478_v15 }
  0xf2   :  { %713 = vmatpush.msrb.mxu3 %v1577_v44 }
  0xf4   :  { %714 = vmatpush.msrb.mxu3 %v1581_v45 }
  0xf6   :  { %863 = vmatpush.msra.mxu3 %v1586_v46 }
  0xf8   :  { %864 = vmatpush.msra.mxu3 %v1591_v47 }
  0xfa   :  { %865 = vmatpush.msra.mxu3 %v1596_v48 }
  0xfc   :  { %866 = vmatpush.msra.mxu3 %v1601_v49 }
  0xfe   :  { %867 = vmatpush.msra.mxu3 %v1606_v50 }
 0x100   :  { %868 = vmatpush.msra.mxu3 %v1611_v51 }
 0x102   :  { %869 = vmatpush.msra.mxu3 %v1616_v52 }
 0x104   :  { %870 = vmatpush.msra.mxu3 %v1621_v53 }
 0x106   :  { %871 = vmatpush.msra.mxu3 %v1626_v54 }
 0x108   :  { %872 = vmatpush.msra.mxu3 %v1631_v55 }
 0x10a   :  { %873 = vmatpush.msra.mxu3 %v1636_v56 }
 0x10c   :  { %874 = vmatpush.msra.mxu3 %v1641_v57 }
 0x10e   :  { %875 = vmatpush.msra.mxu3 %v1646_v58 }
 0x110   :  { %876 = vmatpush.msra.mxu3 %v1651_v59 }
 0x112   :  { %877 = vmatpush.msra.mxu3 %v1656_v61 }
 0x114   :  { %878 = vmatpush.msra.mxu3 %v1661_v63  ;;  %v200_v63 = vpop.f32.mrf.mxu1 }
 0x138   :  { %v434_v62 = vpop.f32.mrf.mxu3 }
 0x139   :  { %v486_v9 = vadd.f32 %v434_v62, %v144_v2 }
 0x13b   :  { %v488_v22 = vmul.f32 0.5, %v486_v9  ;;  %v2150_v9 = vld [vmem:[#allocation22_spill] sm:$0xff] }
 0x13d   :  { %1270 = vtanh.f32 %v488_v22  ;;  %v527_v22 = vpop.permute.xlu1 %526 }
 0x140   :  { %v437_v7 = vpop.f32.mrf.mxu3 }
 0x141   :  { %v487_v33 = vadd.f32 %v437_v7, %v147_v30 }
 0x143   :  { %v489_v31 = vmul.f32 0.5, %v487_v33  ;;  %v1271_v45 = vpop.eup %1270 }
 0x144   :  { %v492_v2 = vmul.f32 0.5, %v1271_v45 }
 0x146   :  { %v494_v15 = vadd.f32 0.5, %v492_v2 }
 0x148   :  { %v457_v28 = vpop.f32.mrf.mxu3 }
 0x149   :  { %v496_v32 = vadd.f32 %v457_v28, %v197_v27 }
 0x14b   :  { %v498_v16 = vmul.f32 0.5, %v496_v32 }
 0x14d   :  { %1272 = vtanh.f32 %v498_v16 }
 0x14e   :  { %1274 = vtanh.f32 %v489_v31  ;;  %v253_v31 = vpop.f32.mrf.mxu2 }
 0x150   :  { %v460_v5 = vpop.f32.mrf.mxu3 }
 0x151   :  { %v497_v62 = vadd.f32 %v460_v5, %v200_v63 }
 0x153   :  { %v499_v61 = vmul.f32 0.5, %v497_v62  ;;  %v1273_v59 = vpop.eup %1272 }
 0x154   :  { %v1275_v12 = vpop.eup %1274  ;;  %v502_v7 = vmul.f32 0.5, %v1273_v59 }
 0x155   :  { %1276 = vtanh.f32 %v499_v61  ;;  %v493_v28 = vmul.f32 0.5, %v1275_v12  ;;  %v541_v61 = vpop.permute.xlu1 %540 }
 0x156   :  { %v504_v32 = vadd.f32 0.5, %v502_v7 }
 0x157   :  { %v495_v16 = vadd.f32 0.5, %v493_v28 }
 0x158   :  { %v480_v44 = vpop.f32.mrf.mxu3  ;;  %v514_v62 = vsub.f32 1.0, %v504_v32 }
 0x159   :  { %v506_v43 = vadd.f32 %v480_v44, %v2150_v9  ;;  %v532_v44 = vpop.permute.xlu2 %531 }
 0x15b   :  { %v508_v27 = vmul.f32 %v506_v43, %v494_v15  ;;  %v1277_v63 = vpop.eup %1276  ;;  %v518_v43 = vmul.f32 %v504_v32, %v1745_v18  ;;  %v548_v15 = vmul.f32 %v541_v61, %v1745_v18 }
 0x15c   :  { %v503_v2 = vmul.f32 0.5, %v1277_v63 }
 0x15d   :  { %v510_v30 = vadd.f32 %v508_v27, %v250_v20 }
 0x15e   :  { %v505_v20 = vadd.f32 0.5, %v503_v2 }
 0x15f   :  { %1278 = vtanh.f32 %v510_v30 }
 0x160   :  { %v483_v33 = vpop.f32.mrf.mxu3  ;;  %v515_v7 = vsub.f32 1.0, %v505_v20 }
 0x161   :  { %v507_v45 = vadd.f32 %v483_v33, %v2150_v9  ;;  %v519_v33 = vmul.f32 %v505_v20, %v1762_v10  ;;  %v546_v32 = vpop.permute.xlu2 %545 }
 0x163   :  { %v509_v5 = vmul.f32 %v507_v45, %v495_v16 }
 0x165   :  { %v1279_v58 = vpop.eup %1278  ;;  %v511_v42 = vadd.f32 %v509_v5, %v253_v31 }
 0x166   :  { %v516_v59 = vmul.f32 %v1279_v58, %v514_v62  ;;  %v549_v58 = vmul.f32 %v546_v32, %v1762_v10 }
 0x167   :  { %1280 = vtanh.f32 %v511_v42 }
 0x168   :  { %v520_v12 = vadd.f32 %v518_v43, %v516_v59 }
 0x16a   :  { %v534_v27 = vmul.f32 %v527_v22, %v520_v12 }
 0x16c   :  { %v1883_v28 = vadd.f32 %v548_v15, %v534_v27 }
 0x16d   :  { %v1281_v30 = vpop.eup %1280 }
 0x16e   :  { %v517_v63 = vmul.f32 %v1281_v30, %v515_v7  ;;  %574 = vmatmul.f32.vlgmr.msrb.gmra.mxu0 %v1883_v28  ;;  %597 = vmatmul.f32.vlgmr.msrb.gmra.mxu1 %v1883_v28 }
 0x16f   :  { %620 = vmatmul.f32.vlgmr.msra.gmra.mxu2 %v1883_v28  ;;  %886 = vmatpush.msrb.mxu0 %v1665_v0 }
 0x170   :  { %v521_v42 = vadd.f32 %v519_v33, %v517_v63  ;;  %981 = vmatpush.msrb.mxu1 %v1498_v23  ;;  %1004 = vmatpush.msra.mxu2 %v1586_v46  ;;  %v2151_v23 = vld [vmem:[#allocation12_spill] sm:$0xff] }
 0x171   :  { %887 = vmatpush.msrb.mxu0 %v1672_v3 }
 0x172   :  { %v535_v18 = vmul.f32 %v532_v44, %v521_v42  ;;  %982 = vmatpush.msrb.mxu1 %v1500_v24  ;;  %1005 = vmatpush.msra.mxu2 %v1591_v47  ;;  %v2152_v24 = vld [vmem:[#allocation16_spill] sm:$0xff] }
 0x173   :  { %888 = vmatpush.msrb.mxu0 %v1677_v6 }
 0x174   :  { %v1897_v22 = vadd.f32 %v549_v58, %v535_v18  ;;  %983 = vmatpush.msrb.mxu1 %v1503_v25  ;;  %1006 = vmatpush.msra.mxu2 %v1596_v48  ;;  %v2153_v25 = vld [vmem:[#allocation23_spill] sm:$0xff]  ;;  %v150_v48 = vpop.f32.mrf.mxu0 }
 0x175   :  { %889 = vmatpush.msrb.mxu0 %v1685_v11 }
 0x176   :  { %577 = vmatmul.f32.gmra.mxu0 %v1897_v22  ;;  %600 = vmatmul.f32.gmra.mxu1 %v1897_v22 }
 0x177   :  { %623 = vmatmul.f32.gmra.mxu2 %v1897_v22  ;;  %890 = vmatpush.msrb.mxu0 %v1690_v13 }
 0x178   :  { %984 = vmatpush.msrb.mxu1 %v1507_v26  ;;  %1007 = vmatpush.msra.mxu2 %v1601_v49  ;;  %v2154_v26 = vld [vmem:[#allocation13_spill] sm:$0xff] }
 0x179   :  { %891 = vmatpush.msrb.mxu0 %v1696_v17 }
 0x17a   :  { %985 = vmatpush.msrb.mxu1 %v1517_v29  ;;  %1008 = vmatpush.msra.mxu2 %v1606_v50  ;;  %v2155_v29 = vld [vmem:[#allocation17_spill] sm:$0xff] }
 0x17b   :  { %892 = vmatpush.msrb.mxu0 %v1702_v21 }
 0x17c   :  { %986 = vmatpush.msrb.mxu1 %v1543_v35  ;;  %1009 = vmatpush.msra.mxu2 %v1611_v51  ;;  %v2156_v35 = vld [vmem:[#allocation24_spill] sm:$0xff]  ;;  %v153_v51 = vpop.f32.mrf.mxu0 }
 0x17d   :  { %893 = vmatpush.msrb.mxu0 %v1710_v34 }
 0x17e   :  { %987 = vmatpush.msrb.mxu1 %v1545_v36  ;;  %1010 = vmatpush.msra.mxu2 %v1616_v52  ;;  %v2157_v36 = vld [vmem:[#allocation14_spill] sm:$0xff] }
 0x17f   :  { %894 = vmatpush.msrb.mxu0 %v1716_v4 }
 0x180   :  { %988 = vmatpush.msrb.mxu1 %v1549_v37  ;;  %1011 = vmatpush.msra.mxu2 %v1621_v53  ;;  %v2158_v37 = vld [vmem:[#allocation18_spill] sm:$0xff] }
 0x181   :  { %895 = vmatpush.msrb.mxu0 %v1720_v8 }
 0x182   :  { %989 = vmatpush.msrb.mxu1 %v1553_v38  ;;  %1012 = vmatpush.msra.mxu2 %v1626_v54  ;;  %v2159_v38 = vld [vmem:[#allocation15_spill] sm:$0xff] }
 0x183   :  { %896 = vmatpush.msrb.mxu0 %v1724_v14 }
 0x184   :  { %990 = vmatpush.msrb.mxu1 %v1559_v39  ;;  %1013 = vmatpush.msra.mxu2 %v1631_v55  ;;  %v2160_v39 = vld [vmem:[#allocation19_spill] sm:$0xff]  ;;  %v1951_v54 = vpop.f32.mrf.mxu0 }
 0x185   :  { %897 = vmatpush.msrb.mxu0 %v1728_v19 }
 0x186   :  { %991 = vmatpush.msrb.mxu1 %v1561_v40  ;;  %1014 = vmatpush.msra.mxu2 %v1636_v56  ;;  %v203_v40 = vpop.f32.mrf.mxu1 }
 0x187   :  { %898 = vmatpush.msrb.mxu0 %v1733_v60 }
 0x188   :  { %992 = vmatpush.msrb.mxu1 %v1565_v41  ;;  %1015 = vmatpush.msra.mxu2 %v1641_v57  ;;  %v256_v41 = vpop.f32.mrf.mxu2 }
 0x189   :  { %899 = vmatpush.msrb.mxu0 %v1737_v1 }
 0x18a   :  { %993 = vmatpush.msrb.mxu1 %v2151_v23  ;;  %1016 = vmatpush.msra.mxu2 %v2152_v24 }
 0x18b   :  { %900 = vmatpush.msrb.mxu0 %v2153_v25 }
 0x18c   :  { %994 = vmatpush.msrb.mxu1 %v2154_v26  ;;  %1017 = vmatpush.msra.mxu2 %v2155_v29  ;;  %v1957_v57 = vpop.f32.mrf.mxu0 }
 0x18d   :  { %901 = vmatpush.msrb.mxu0 %v2156_v35 }
 0x18e   :  { %995 = vmatpush.msrb.mxu1 %v2157_v36  ;;  %1018 = vmatpush.msra.mxu2 %v2158_v37  ;;  %v206_v46 = vpop.f32.mrf.mxu1 }
 0x190   :  { %996 = vmatpush.msrb.mxu1 %v2159_v38  ;;  %1019 = vmatpush.msra.mxu2 %v2160_v39  ;;  %v259_v47 = vpop.f32.mrf.mxu2 }
 0x194   :  { %v1963_v45 = vpop.f32.mrf.mxu0 }
 0x196   :  { %v1943_v49 = vpop.f32.mrf.mxu1 }
 0x198   :  { %v1945_v50 = vpop.f32.mrf.mxu2 }
 0x19c   :  { %v1969_v62 = vpop.f32.mrf.mxu0 }
 0x19e   :  { %v1947_v52 = vpop.f32.mrf.mxu1 }
 0x1a0   :  { %v1949_v53 = vpop.f32.mrf.mxu2 }
 0x1a6   :  { %v1953_v55 = vpop.f32.mrf.mxu1 }
 0x1a8   :  { %v1955_v56 = vpop.f32.mrf.mxu2 }
 0x1ae   :  { %v1959_v10 = vpop.f32.mrf.mxu1 }
 0x1b0   :  { %v1961_v16 = vpop.f32.mrf.mxu2 }
 0x1b6   :  { %v1965_v31 = vpop.f32.mrf.mxu1 }
 0x1b8   :  { %v1967_v5 = vpop.f32.mrf.mxu2 }
 0x1be   :  { %v1971_v2 = vpop.f32.mrf.mxu1 }
 0x1c0   :  { %v1973_v44 = vpop.f32.mrf.mxu2 }
 0x1eb   :  { %v575_v43 = vpop.f32.mrf.mxu0  ;;  %v598_v59 = vpop.f32.mrf.mxu1 }
 0x1ec   :  { %v627_v61 = vadd.f32 %v575_v43, %v150_v48  ;;  %v637_v20 = vadd.f32 %v598_v59, %v203_v40 }
 0x1ee   :  { %v629_v12 = vmul.f32 0.5, %v627_v61  ;;  %v639_v15 = vmul.f32 0.5, %v637_v20 }
 0x1f0   :  { %1282 = vtanh.f32 %v629_v12 }
 0x1f1   :  { %1284 = vtanh.f32 %v639_v15 }
 0x1f2   :  { %v621_v30 = vpop.f32.mrf.mxu2 }
 0x1f3   :  { %v578_v27 = vpop.f32.mrf.mxu0  ;;  %v601_v7 = vpop.f32.mrf.mxu1  ;;  %v647_v26 = vadd.f32 %v621_v30, %v2150_v9 }
 0x1f4   :  { %v628_v33 = vadd.f32 %v578_v27, %v153_v51  ;;  %v638_v63 = vadd.f32 %v601_v7, %v206_v46  ;;  %v668_v30 = vpop.permute.xlu0 %667 }
 0x1f6   :  { %v1283_v32 = vpop.eup %1282  ;;  %v630_v42 = vmul.f32 0.5, %v628_v33  ;;  %v640_v18 = vmul.f32 0.5, %v638_v63  ;;  %v682_v63 = vpop.permute.xlu1 %681 }
 0x1f7   :  { %v633_v58 = vmul.f32 0.5, %v1283_v32  ;;  %v1285_v23 = vpop.eup %1284 }
 0x1f8   :  { %1286 = vtanh.f32 %v630_v42  ;;  %v643_v36 = vmul.f32 0.5, %v1285_v23  ;;  %v689_v42 = vmul.f32 %v682_v63, %v1883_v28 }
 0x1f9   :  { %v635_v24 = vadd.f32 0.5, %v633_v58  ;;  %1288 = vtanh.f32 %v640_v18 }
 0x1fa   :  { %v624_v39 = vpop.f32.mrf.mxu2  ;;  %v645_v48 = vadd.f32 0.5, %v643_v36  ;;  %v673_v36 = vpop.permute.xlu2 %672 }
 0x1fb   :  { %v649_v29 = vmul.f32 %v647_v26, %v635_v24  ;;  %v648_v43 = vadd.f32 %v624_v39, %v2150_v9 }
 0x1fc   :  { %v655_v61 = vsub.f32 1.0, %v645_v48  ;;  %v659_v27 = vmul.f32 %v645_v48, %v1883_v28 }
 0x1fd   :  { %v651_v37 = vadd.f32 %v649_v29, %v256_v41  ;;  %v687_v29 = vpop.permute.xlu0 %686 }
 0x1fe   :  { %v1287_v38 = vpop.eup %1286 }
 0x1ff   :  { %1290 = vtanh.f32 %v651_v37  ;;  %v634_v40 = vmul.f32 0.5, %v1287_v38  ;;  %v1289_v51 = vpop.eup %1288  ;;  %v690_v37 = vmul.f32 %v687_v29, %v1897_v22 }
 0x200   :  { %v644_v20 = vmul.f32 0.5, %v1289_v51 }
 0x201   :  { %v636_v46 = vadd.f32 0.5, %v634_v40 }
 0x202   :  { %v646_v33 = vadd.f32 0.5, %v644_v20  ;;  %v823_v63 = vpop.permute.xlu2 %822 }
 0x203   :  { %v650_v59 = vmul.f32 %v648_v43, %v636_v46 }
 0x204   :  { %v656_v58 = vsub.f32 1.0, %v646_v33  ;;  %v660_v24 = vmul.f32 %v646_v33, %v1897_v22 }
 0x205   :  { %v1291_v12 = vpop.eup %1290  ;;  %v652_v15 = vadd.f32 %v650_v59, %v259_v47  ;;  %v814_v29 = vpop.permute.xlu0 %813 }
 0x206   :  { %v657_v7 = vmul.f32 %v1291_v12, %v655_v61 }
 0x207   :  { %1292 = vtanh.f32 %v652_v15 }
 0x208   :  { %v661_v41 = vadd.f32 %v659_v27, %v657_v7 }
 0x20a   :  { %v675_v32 = vmul.f32 %v668_v30, %v661_v41  ;;  %v809_v41 = vpop.permute.xlu1 %808 }
 0x20c   :  { %v1979_v18 = vadd.f32 %v689_v42, %v675_v32 }
 0x20d   :  { %v1293_v23 = vpop.eup %1292 }
 0x20e   :  { %v658_v26 = vmul.f32 %v1293_v23, %v656_v58  ;;  %715 = vmatmul.f32.vlgmr.msrb.gmra.mxu3 %v1979_v18  ;;  %738 = vmatmul.f32.vlgmr.msra.gmra.mxu0 %v1979_v18  ;;  %v830_v42 = vmul.f32 %v823_v63, %v1979_v18 }
 0x20f   :  { %761 = vmatmul.f32.vlgmr.msra.gmra.mxu1 %v1979_v18  ;;  %1027 = vmatpush.msrb.mxu3 %v1665_v0 }
 0x210   :  { %v662_v47 = vadd.f32 %v660_v24, %v658_v26 }
 0x211   :  { %1028 = vmatpush.msrb.mxu3 %v1672_v3 }
 0x212   :  { %v676_v28 = vmul.f32 %v673_v36, %v662_v47  ;;  %v828_v36 = vpop.permute.xlu1 %827 }
 0x213   :  { %1029 = vmatpush.msrb.mxu3 %v1677_v6 }
 0x214   :  { %v1989_v38 = vadd.f32 %v690_v37, %v676_v28 }
 0x215   :  { %1030 = vmatpush.msrb.mxu3 %v1685_v11 }
 0x216   :  { %718 = vmatmul.f32.gmra.mxu3 %v1989_v38  ;;  %741 = vmatmul.f32.gmra.mxu0 %v1989_v38  ;;  %v831_v37 = vmul.f32 %v828_v36, %v1989_v38  ;;  %v1127_v36 = vld [vmem:[%s2120_s3 + $0x58] sm:$0xff] }
 0x217   :  { %764 = vmatmul.f32.gmra.mxu1 %v1989_v38  ;;  %1031 = vmatpush.msrb.mxu3 %v1690_v13 }
 0x219   :  { %1032 = vmatpush.msrb.mxu3 %v1696_v17 }
 0x21b   :  { %1033 = vmatpush.msrb.mxu3 %v1702_v21 }
 0x21d   :  { %1034 = vmatpush.msrb.mxu3 %v1710_v34 }
 0x21f   :  { %1035 = vmatpush.msrb.mxu3 %v1716_v4 }
 0x221   :  { %1036 = vmatpush.msrb.mxu3 %v1720_v8 }
 0x223   :  { %1037 = vmatpush.msrb.mxu3 %v1724_v14 }
 0x225   :  { %1038 = vmatpush.msrb.mxu3 %v1728_v19 }
 0x227   :  { %1039 = vmatpush.msrb.mxu3 %v1733_v60 }
 0x229   :  { %1040 = vmatpush.msrb.mxu3 %v1737_v1 }
 0x22b   :  { %1041 = vmatpush.msrb.mxu3 %v2153_v25 }
 0x22d   :  { %1042 = vmatpush.msrb.mxu3 %v2156_v35 }
 0x28b   :  { %v739_v0 = vpop.f32.mrf.mxu0 }
 0x28c   :  { %v778_v3 = vadd.f32 %v739_v0, %v1943_v49  ;;  %v762_v8 = vpop.f32.mrf.mxu1 }
 0x28d   :  { %v788_v35 = vadd.f32 %v762_v8, %v2150_v9 }
 0x28e   :  { %v780_v17 = vmul.f32 0.5, %v778_v3 }
 0x291   :  { %v716_v6 = vpop.f32.mrf.mxu3 }
 0x292   :  { %v768_v11 = vadd.f32 %v716_v6, %v1951_v54 }
 0x293   :  { %v742_v21 = vpop.f32.mrf.mxu0 }
 0x294   :  { %v770_v13 = vmul.f32 0.5, %v768_v11  ;;  %v779_v34 = vadd.f32 %v742_v21, %v1947_v52  ;;  %v765_v52 = vpop.f32.mrf.mxu1 }
 0x295   :  { %v789_v43 = vadd.f32 %v765_v52, %v2150_v9 }
 0x296   :  { %1294 = vtanh.f32 %v770_v13  ;;  %v781_v22 = vmul.f32 0.5, %v779_v34 }
 0x297   :  { %1296 = vtanh.f32 %v780_v17 }
 0x299   :  { %v719_v4 = vpop.f32.mrf.mxu3 }
 0x29a   :  { %v769_v14 = vadd.f32 %v719_v4, %v1957_v57 }
 0x29c   :  { %v1295_v19 = vpop.eup %1294  ;;  %v771_v60 = vmul.f32 0.5, %v769_v14 }
 0x29d   :  { %v774_v1 = vmul.f32 0.5, %v1295_v19  ;;  %v1297_v25 = vpop.eup %1296 }
 0x29e   :  { %1298 = vtanh.f32 %v771_v60  ;;  %v784_v39 = vmul.f32 0.5, %v1297_v25 }
 0x29f   :  { %v776_v49 = vadd.f32 0.5, %v774_v1  ;;  %1300 = vtanh.f32 %v781_v22 }
 0x2a0   :  { %v786_v46 = vadd.f32 0.5, %v784_v39 }
 0x2a1   :  { %v790_v54 = vmul.f32 %v788_v35, %v776_v49 }
 0x2a2   :  { %v796_v20 = vsub.f32 1.0, %v786_v46  ;;  %v800_v7 = vmul.f32 %v786_v46, %v1979_v18 }
 0x2a3   :  { %v792_v40 = vadd.f32 %v790_v54, %v1945_v50 }
 0x2a4   :  { %v1299_v48 = vpop.eup %1298 }
 0x2a5   :  { %1302 = vtanh.f32 %v792_v40  ;;  %v775_v51 = vmul.f32 0.5, %v1299_v48  ;;  %v1301_v57 = vpop.eup %1300 }
 0x2a6   :  { %v785_v12 = vmul.f32 0.5, %v1301_v57 }
 0x2a7   :  { %v777_v59 = vadd.f32 0.5, %v775_v51 }
 0x2a8   :  { %v787_v50 = vadd.f32 0.5, %v785_v12  ;;  %v950_v12 = vpop.permute.xlu2 %949 }
 0x2a9   :  { %v791_v61 = vmul.f32 %v789_v43, %v777_v59 }
 0x2aa   :  { %v797_v58 = vsub.f32 1.0, %v787_v50  ;;  %v801_v26 = vmul.f32 %v787_v50, %v1989_v38 }
 0x2ab   :  { %v1303_v15 = vpop.eup %1302  ;;  %v793_v27 = vadd.f32 %v791_v61, %v1949_v53 }
 0x2ac   :  { %v798_v30 = vmul.f32 %v1303_v15, %v796_v20 }
 0x2ad   :  { %1304 = vtanh.f32 %v793_v27  ;;  %v964_v27 = vpop.permute.xlu0 %963 }
 0x2ae   :  { %v802_v33 = vadd.f32 %v800_v7, %v798_v30 }
 0x2b0   :  { %v816_v32 = vmul.f32 %v809_v41, %v802_v33 }
 0x2b2   :  { %v832_v23 = vadd.f32 %v830_v42, %v816_v32  ;;  %v955_v32 = vpop.permute.xlu1 %954  ;;  %v969_v42 = vpop.permute.xlu2 %968 }
 0x2b3   :  { %v1305_v24 = vpop.eup %1304 }
 0x2b4   :  { %v799_v47 = vmul.f32 %v1305_v24, %v797_v58  ;;  %856 = vmatmul.f32.vlgmr.msrb.gmra.mxu2 %v832_v23  ;;  %879 = vmatmul.f32.vlgmr.msra.gmra.mxu3 %v832_v23  ;;  %v971_v30 = vmul.f32 %v964_v27, %v832_v23 }
 0x2b5   :  { %902 = vmatmul.f32.vlgmr.msrb.gmra.mxu0 %v832_v23 }
 0x2b6   :  { %v803_v53 = vadd.f32 %v801_v26, %v799_v47  ;;  %v1131_v26 = vld [vmem:[%s2120_s3 + $0x78] sm:$0xff]  ;;  %v1130_v47 = vld [vmem:[%s2120_s3 + $0x70] sm:$0xff] }
 0x2b7   :  { %1136 = vmatpush.msra.mxu0 %v1131_v26 }
 0x2b8   :  { %v817_v28 = vmul.f32 %v814_v29, %v803_v53  ;;  %v1129_v53 = vld [vmem:[%s2120_s3 + $0x68] sm:$0xff]  ;;  %v1128_v29 = vld [vmem:[%s2120_s3 + $0x60] sm:$0xff] }
 0x2b9   :  { %1137 = vmatpush.msra.mxu0 %v1130_v47 }
 0x2ba   :  { %v2019_v0 = vadd.f32 %v831_v37, %v817_v28  ;;  %v1126_v28 = vld [vmem:[%s2120_s3 + $0x50] sm:$0xff]  ;;  %v1125_v37 = vld [vmem:[%s2120_s3 + $0x48] sm:$0xff] }
 0x2bb   :  { %1138 = vmatpush.msra.mxu0 %v1129_v53 }
 0x2bc   :  { %859 = vmatmul.f32.gmra.mxu2 %v2019_v0  ;;  %882 = vmatmul.f32.gmra.mxu3 %v2019_v0  ;;  %v972_v24 = vmul.f32 %v969_v42, %v2019_v0 }
 0x2bd   :  { %905 = vmatmul.f32.gmra.mxu0 %v2019_v0 }
 0x2be   :  { %1139 = vmatpush.msra.mxu0 %v1128_v29 }
 0x2c0   :  { %1140 = vmatpush.msra.mxu0 %v1127_v36 }
 0x2c2   :  { %1141 = vmatpush.msra.mxu0 %v1126_v28  ;;  %v1096_v28 = vpop.permute.xlu2 %1095 }
 0x2c4   :  { %1142 = vmatpush.msra.mxu0 %v1125_v37 }
 0x332   :  { %v903_v34 = vpop.f32.mrf.mxu0 }
 0x337   :  { %v857_v18 = vpop.f32.mrf.mxu2  ;;  %v880_v3 = vpop.f32.mrf.mxu3 }
 0x338   :  { %v909_v6 = vadd.f32 %v857_v18, %v1963_v45  ;;  %v919_v11 = vadd.f32 %v880_v3, %v1953_v55  ;;  %v929_v45 = vadd.f32 %v903_v34, %v2150_v9  ;;  %v1123_v18 = vld [vmem:[%s2120_s3 + $0x38] sm:$0xff]  ;;  %v1122_v3 = vld [vmem:[%s2120_s3 + $0x30] sm:$0xff]  ;;  %v1116_v34 = vld [vmem:[%s2120_s3] sm:$0xff] }
 0x33a   :  { %v911_v13 = vmul.f32 0.5, %v909_v6  ;;  %v921_v17 = vmul.f32 0.5, %v919_v11  ;;  %v906_v39 = vpop.f32.mrf.mxu0  ;;  %v1121_v6 = vld [vmem:[%s2120_s3 + $0x28] sm:$0xff]  ;;  %v1120_v11 = vld [vmem:[%s2120_s3 + $0x20] sm:$0xff] }
 0x33b   :  { %v930_v48 = vadd.f32 %v906_v39, %v2150_v9 }
 0x33c   :  { %1306 = vtanh.f32 %v911_v13  ;;  %v1119_v13 = vld [vmem:[%s2120_s3 + $0x18] sm:$0xff] }
 0x33d   :  { %1308 = vtanh.f32 %v921_v17  ;;  %v1118_v17 = vld [vmem:[%s2120_s3 + $0x10] sm:$0xff] }
 0x33f   :  { %v860_v21 = vpop.f32.mrf.mxu2  ;;  %v883_v38 = vpop.f32.mrf.mxu3 }
 0x340   :  { %v910_v4 = vadd.f32 %v860_v21, %v1969_v62  ;;  %v920_v8 = vadd.f32 %v883_v38, %v1959_v10  ;;  %v1117_v21 = vld [vmem:[%s2120_s3 + $0x8] sm:$0xff] }
 0x342   :  { %v1307_v14 = vpop.eup %1306  ;;  %v912_v19 = vmul.f32 0.5, %v910_v4  ;;  %v922_v1 = vmul.f32 0.5, %v920_v8  ;;  %v2161_v4 = vld [vmem:[#allocation20_spill] sm:$0xff] }
 0x343   :  { %v915_v60 = vmul.f32 0.5, %v1307_v14  ;;  %v1309_v22 = vpop.eup %1308 }
 0x344   :  { %1310 = vtanh.f32 %v912_v19  ;;  %v925_v35 = vmul.f32 0.5, %v1309_v22 }
 0x345   :  { %v917_v55 = vadd.f32 0.5, %v915_v60  ;;  %1312 = vtanh.f32 %v922_v1 }
 0x346   :  { %v927_v40 = vadd.f32 0.5, %v925_v35 }
 0x347   :  { %v931_v25 = vmul.f32 %v929_v45, %v917_v55  ;;  %v2162_v55 = vld [vmem:[#allocation21_spill] sm:$0xff] }
 0x348   :  { %v937_v46 = vsub.f32 1.0, %v927_v40  ;;  %v941_v20 = vmul.f32 %v927_v40, %v832_v23 }
 0x349   :  { %v933_v49 = vadd.f32 %v931_v25, %v1955_v56 }
 0x34a   :  { %v1311_v54 = vpop.eup %1310 }
 0x34b   :  { %1314 = vtanh.f32 %v933_v49  ;;  %v916_v62 = vmul.f32 0.5, %v1311_v54  ;;  %v1313_v10 = vpop.eup %1312 }
 0x34c   :  { %v926_v57 = vmul.f32 0.5, %v1313_v10 }
 0x34d   :  { %v918_v52 = vadd.f32 0.5, %v916_v62  ;;  %v1330_v62 = vld [vmem:[#allocation3 + $0x33] ss:$0 sm:$0xff] }
 0x34e   :  { %v928_v15 = vadd.f32 0.5, %v926_v57 }
 0x34f   :  { %v932_v51 = vmul.f32 %v930_v48, %v918_v52 }
 0x350   :  { %v938_v50 = vsub.f32 1.0, %v928_v15  ;;  %v942_v63 = vmul.f32 %v928_v15, %v2019_v0  ;;  %v1124_v0 = vld [vmem:[%s2120_s3 + $0x40] sm:$0xff] }
 0x351   :  { %v1315_v43 = vpop.eup %1314  ;;  %v934_v59 = vadd.f32 %v932_v51, %v1961_v16  ;;  %1143 = vmatpush.msra.mxu0 %v1124_v0 }
 0x352   :  { %v939_v61 = vmul.f32 %v1315_v43, %v937_v46 }
 0x353   :  { %1316 = vtanh.f32 %v934_v59  ;;  %1144 = vmatpush.msra.mxu0 %v1123_v18 }
 0x354   :  { %v943_v56 = vadd.f32 %v941_v20, %v939_v61 }
 0x355   :  { %1145 = vmatpush.msra.mxu0 %v1122_v3 }
 0x356   :  { %v957_v7 = vmul.f32 %v950_v12, %v943_v56 }
 0x357   :  { %1146 = vmatpush.msra.mxu0 %v1121_v6  ;;  %v1132_v6 = vld [vmem:[%s2120_s3 + $0x80] sm:$0xff] }
 0x358   :  { %v2032_v41 = vadd.f32 %v971_v30, %v957_v7 }
 0x359   :  { %v1317_v9 = vpop.eup %1316  ;;  %1147 = vmatpush.msra.mxu0 %v1120_v11 }
 0x35a   :  { %v940_v33 = vmul.f32 %v1317_v9, %v938_v50  ;;  %997 = vmatmul.f32.vlgmr.msrb.gmra.mxu1 %v2032_v41  ;;  %1020 = vmatmul.f32.vlgmr.msra.gmra.mxu2 %v2032_v41 }
 0x35b   :  { %1043 = vmatmul.f32.vlgmr.msrb.gmra.mxu3 %v2032_v41  ;;  %1148 = vmatpush.msra.mxu0 %v1119_v13 }
 0x35c   :  { %v944_v16 = vadd.f32 %v942_v63, %v940_v33  ;;  %v1091_v63 = vpop.permute.xlu0 %1090 }
 0x35d   :  { %1149 = vmatpush.msra.mxu0 %v1118_v17 }
 0x35e   :  { %v958_v58 = vmul.f32 %v955_v32, %v944_v16  ;;  %v1105_v32 = vpop.permute.xlu1 %1104 }
 0x35f   :  { %1150 = vmatpush.msra.mxu0 %v1117_v21  ;;  %v1134_v21 = vld [vmem:[%s2120_s3 + $0x90] sm:$0x3] }
 0x360   :  { %v2039_v23 = vadd.f32 %v972_v24, %v958_v58  ;;  %v1112_v58 = vmul.f32 %v1105_v32, %v2032_v41 }
 0x361   :  { %1151 = vmatpush.msra.mxu0 %v1116_v34 }
 0x362   :  { %1000 = vmatmul.f32.gmra.mxu1 %v2039_v23  ;;  %1023 = vmatmul.f32.gmra.mxu2 %v2039_v23 }
 0x363   :  { %1046 = vmatmul.f32.gmra.mxu3 %v2039_v23 }
 0x3d7   :  { %v998_v38 = vpop.f32.mrf.mxu1 }
 0x3d8   :  { %v1050_v8 = vadd.f32 %v998_v38, %v2161_v4 }
 0x3da   :  { %v1052_v14 = vmul.f32 0.5, %v1050_v8 }
 0x3dc   :  { %1318 = vtanh.f32 %v1052_v14 }
 0x3dd   :  { %v1021_v19 = vpop.f32.mrf.mxu2 }
 0x3de   :  { %v1060_v60 = vadd.f32 %v1021_v19, %v1965_v31  ;;  %v1044_v45 = vpop.f32.mrf.mxu3 }
 0x3df   :  { %v1001_v1 = vpop.f32.mrf.mxu1  ;;  %v1070_v40 = vadd.f32 %v1330_v62, %v1044_v45 }
 0x3e0   :  { %v1062_v22 = vmul.f32 0.5, %v1060_v60  ;;  %v1051_v25 = vadd.f32 %v1001_v1, %v2162_v55 }
 0x3e2   :  { %v1319_v35 = vpop.eup %1318  ;;  %1320 = vtanh.f32 %v1062_v22  ;;  %v1053_v49 = vmul.f32 0.5, %v1051_v25 }
 0x3e3   :  { %v1056_v54 = vmul.f32 0.5, %v1319_v35 }
 0x3e4   :  { %1322 = vtanh.f32 %v1053_v49 }
 0x3e5   :  { %v1058_v39 = vadd.f32 0.5, %v1056_v54  ;;  %v1024_v10 = vpop.f32.mrf.mxu2 }
 0x3e6   :  { %v1061_v48 = vadd.f32 %v1024_v10, %v1971_v2  ;;  %v1047_v59 = vpop.f32.mrf.mxu3 }
 0x3e7   :  { %v1072_v52 = vmul.f32 %v1070_v40, %v1058_v39  ;;  %v1071_v56 = vadd.f32 %v1330_v62, %v1047_v59 }
 0x3e8   :  { %v1321_v51 = vpop.eup %1320  ;;  %v1063_v46 = vmul.f32 0.5, %v1061_v48 }
 0x3e9   :  { %v1066_v31 = vmul.f32 0.5, %v1321_v51  ;;  %v1074_v57 = vadd.f32 %v1072_v52, %v1967_v5 }
 0x3ea   :  { %v1323_v43 = vpop.eup %1322  ;;  %1324 = vtanh.f32 %v1063_v46 }
 0x3eb   :  { %1326 = vtanh.f32 %v1074_v57  ;;  %v1057_v61 = vmul.f32 0.5, %v1323_v43  ;;  %v1068_v20 = vadd.f32 0.5, %v1066_v31 }
 0x3ed   :  { %v1059_v12 = vadd.f32 0.5, %v1057_v61  ;;  %v1078_v7 = vsub.f32 1.0, %v1068_v20  ;;  %v1082_v9 = vmul.f32 %v1068_v20, %v2032_v41  ;;  %v1133_v41 = vld [vmem:[%s2120_s3 + $0x88] sm:$0xff] }
 0x3ef   :  { %v1073_v15 = vmul.f32 %v1071_v56, %v1059_v12 }
 0x3f0   :  { %v1325_v27 = vpop.eup %1324 }
 0x3f1   :  { %v1327_v30 = vpop.eup %1326  ;;  %v1067_v50 = vmul.f32 0.5, %v1325_v27  ;;  %v1075_v2 = vadd.f32 %v1073_v15, %v1973_v44  ;;  %v1110_v44 = vpop.permute.xlu0 %1109 }
 0x3f2   :  { %v1080_v33 = vmul.f32 %v1327_v30, %v1078_v7  ;;  %v1113_v0 = vmul.f32 %v1110_v44, %v2039_v23 }
 0x3f3   :  { %1328 = vtanh.f32 %v1075_v2  ;;  %v1069_v5 = vadd.f32 0.5, %v1067_v50 }
 0x3f4   :  { %v1084_v16 = vadd.f32 %v1082_v9, %v1080_v33 }
 0x3f5   :  { %v1079_v24 = vsub.f32 1.0, %v1069_v5  ;;  %v1083_v53 = vmul.f32 %v1069_v5, %v2039_v23  ;;  %v1257_v23 = vld [vmem:[%s2120_s3 + $0x92] ss:$0 sm:$0xff] }
 0x3f6   :  { %v1098_v42 = vmul.f32 %v1091_v63, %v1084_v16 }
 0x3f8   :  { %v1114_v26 = vadd.f32 %v1112_v58, %v1098_v42 }
 0x3f9   :  { %v1329_v47 = vpop.eup %1328 }
 0x3fa   :  { %1152 = vmatmul.f32.vlgmr.msra.gmra.mxu0 %v1114_v26  ;;  %v1081_v29 = vmul.f32 %v1329_v47, %v1079_v24 }
 0x3fc   :  { %v1085_v36 = vadd.f32 %v1083_v53, %v1081_v29 }
 0x3fe   :  { %v1099_v37 = vmul.f32 %v1096_v28, %v1085_v36 }
 0x400   :  { %v1115_v18 = vadd.f32 %v1113_v0, %v1099_v37 }
 0x402   :  { %1155 = vmatmul.f32.gmra.mxu0 %v1115_v18 }
 0x477   :  { %v1153_v3 = vpop.f32.mrf.mxu0 }
 0x478   :  { %v1159_v17 = vmul.f32 %v1153_v3, %v1132_v6 }
 0x47f   :  { %v1156_v11 = vpop.f32.mrf.mxu0 }
 0x480   :  { %v1160_v13 = vmul.f32 %v1156_v11, %v1133_v41 }
 0x482   :  { %1180 = vmatpush.msra.mxu1 %v1160_v13 }
 0x484   :  { %1181 = vmatpush.msra.mxu1 %v1159_v17 }
 0x485   :  { %1244 = vmatmul.msk.f32.vlgmr.msra.gmra.mxu1 %vm1162_vm2, %v1134_v21 }
 0x502   :  { %v1183_v38 = vpop.f32.mrf.mxu1 }
 0x503   :  { %v1184_v34 = vadd.f32 %v1257_v23, %v1183_v38 }
 0x505   :  { %1186 = vst [vmem:[#allocation8] sm:$0x3] %v1184_v34 }
 0x506   :  { %1197 = dma.vmem_to_hbm [thread:$0]  %s1193_s7, 32, %s1195_s10, [#allocation5]  }
 0x507   :  { %1407 = dma.done.wait [#allocation5], 32  }
 0x508   :  { %1408 = vsyncadd [#allocation5], 4294967264 }
 0x509   :  { %1202 = vsyncpa [#allocation4], 1 }
 0x50a   :  { %1203 = vsyncpa [#allocation7], 1 }
 0x50b   :  { %1204 = vsyncpa [#allocation5], 1 }

</bundles_post_ra>
